<compile_context>
chip_gen: v7x
topology: tpu7x:2x2x1
jax: 0.10.0
libtpu: 0.0.40
codegen_flags: <defaults>
</compile_context>

<pallas_src>
import functools

import jax
import jax.numpy as jnp
import numpy as np
from jax.experimental import pallas as pl
from jax.experimental.pallas import tpu as pltpu

_SILU_SCALE = 1.0 / 0.6   # ScaledSiLU scale factor
NUM_MLPS = 5              # OutputConfig(num_mlps=5) -> 5 linear layers
_LANES = 128              # lane width / minimum last-dim alignment


def _round_up(x, m):
    return (x + m - 1) // m * m


def _cdiv(a, b):
    return (a + b - 1) // b


def _vmem_capacity_bytes():
    """Per-TensorCore VMEM capacity (v5e/v6e: 128 MiB, v7x: 64 MiB)."""
    try:
        info = pltpu.get_tpu_info()
        cap = int(getattr(info, "vmem_capacity_bytes", 0) or 0)
        if cap > 0:
            return cap
    except Exception:
        pass
    kind = jax.devices()[0].device_kind.lower()
    if "v5" in kind or "v6" in kind:
        return 128 * 1024 * 1024
    return 64 * 1024 * 1024      # v7x / conservative default


def _default_num_core_splits():
    """v7x has 2 TensorCores per chip; v5e/v6e have 1."""
    try:
        kind = jax.devices()[0].device_kind.lower()
        if "7" in kind:
            return 2
    except Exception:
        pass
    return 1


def _default_bf16_act():
    """bf16 EUP/VPU exists on v6e/v7x only; keep f32 activations on v2-v5."""
    try:
        kind = jax.devices()[0].device_kind.lower()
        return not any(t in kind for t in ("v2", "v3", "v4", "v5"))
    except Exception:
        return False


def _pick_tile_n(rows_per_split, e_pad, b_pad, vmem_cap, max_tile_n):
    """Largest 128-multiple node tile that keeps the pipeline under ~70% VMEM."""
    resident = (
        2 * (4 * e_pad * e_pad * 2 + 4 * e_pad * 4)        # hidden W (bf16) + b (f32), 2x buf
        + 2 * (e_pad * _LANES * 4 + _LANES * 4)            # final W/b (f32), 2x buf
        + b_pad * e_pad * 4 + b_pad * _LANES * 4           # accumulators
        + 2 * b_pad * _LANES * 4                           # output slab
    )
    avail = int(0.7 * vmem_cap) - resident
    per_row = 2 * (e_pad * 2 + 4)                          # 2x-buffered bf16 row + int32 idx
    t = avail // per_row if per_row > 0 else max_tile_n
    t = int(min(t, max_tile_n, _round_up(max(rows_per_split, 1), _LANES)))
    return max(_LANES, (t // _LANES) * _LANES)


def _graph_binary_cls_head_kernel(
        x_ref, bidx_ref,
        w0_ref, b0_ref, w1_ref, b1_ref, w2_ref, b2_ref, w3_ref, b3_ref,
        w4_ref, b4_ref,
        out_ref,
        pooled_acc, count_acc,
        *, bf16_act):
    """One node tile per inner grid step: MLP -> one-hot pooling -> (last) E->1."""
    step = pl.program_id(1)

    @pl.when(step == 0)
    def _init():
        pooled_acc[...] = jnp.zeros_like(pooled_acc)
        count_acc[...] = jnp.zeros_like(count_acc)

    # ---- node MLP on this (TN, E_pad) tile: 4x (Linear + SiLU). ScaledSiLU's
    # 1/0.6 factor is folded into the *next* layer's weights in the wrapper.
    # SiLU uses the single-EUP tanh form: silu(z) = 0.5*z*(1 + tanh(0.5*z)). ----
    h = x_ref[...]                                                    # (TN, E_pad) bf16
    for w_ref, b_ref in ((w0_ref, b0_ref), (w1_ref, b1_ref),
                         (w2_ref, b2_ref), (w3_ref, b3_ref)):
        z = jnp.dot(h, w_ref[...], preferred_element_type=jnp.float32)  # MXU bf16 in / f32 acc
        z = z + b_ref[...]                                               # f32 bias
        if bf16_act:      # v6e/v7x: bf16 EUP runs ~2x f32; result is bf16 anyway
            zb = z.astype(jnp.bfloat16)
            h = ((0.5 * zb) * (1.0 + jnp.tanh(0.5 * zb))).astype(jnp.bfloat16)
        else:             # v2-v5: keep the activation in f32 (no bf16 EUP path)
            h = ((0.5 * z) * (1.0 + jnp.tanh(0.5 * z))).astype(jnp.bfloat16)

    # ---- scatter-sum as one-hot matmul; mask built in-kernel (never in HBM).
    # Padded rows carry bidx = -1 so they never match any graph row. ----
    b_pad = count_acc.shape[0]
    tn = h.shape[0]
    graph_ids = jax.lax.broadcasted_iota(jnp.int32, (b_pad, tn), 0)
    seg = (graph_ids == bidx_ref[...]).astype(jnp.bfloat16)             # (B_pad, TN)

    pooled_acc[...] += jnp.dot(seg, h, preferred_element_type=jnp.float32)   # (B_pad, E_pad)
    count_acc[...] += jnp.sum(seg.astype(jnp.float32), axis=1, keepdims=True)

    # ---- final Linear(E -> 1) on this split's partial sums (lane-dense slab).
    # Splits are combined by a sum in the wrapper (projection is linear). ----
    @pl.when(step == pl.num_programs(1) - 1)
    def _finalize():
        scores = jnp.dot(pooled_acc[...], w4_ref[...],
                         preferred_element_type=jnp.float32)             # (B_pad, 128)
        out_ref[...] = scores + count_acc[...] * b4_ref[...]             # col 0 holds the answer


def graph_binary_classification_head(x, batch_idx, params, num_graphs, *,
                                      tile_n=None, max_tile_n=1024,
                                      num_core_splits=None, bf16_act=None):
    """x: (N, E) node features; batch_idx: (N,) int graph id per node.

    params: list of NUM_MLPS (w, b) pairs with shapes [(E,E),(1,E)]*4 + [(E,1),(1,1)].
    Returns (num_graphs,) graph-level logits (reduce='sum').
    """
    n, e = x.shape
    assert len(params) == NUM_MLPS

    if bf16_act is None:
        bf16_act = _default_bf16_act()

    e_pad = _round_up(e, _LANES)
    b_pad = _round_up(max(int(num_graphs), 1), 8)
    vmem_cap = _vmem_capacity_bytes()

    # ---- grid geometry: (core splits, node tiles per split) ----
    num_splits = num_core_splits if num_core_splits is not None else _default_num_core_splits()
    num_splits = max(1, min(int(num_splits), max(1, _cdiv(max(n, 1), _LANES))))
    rows_per_split = _cdiv(max(n, 1), num_splits)

    if tile_n is None:
        tile_n = _pick_tile_n(rows_per_split, e_pad, b_pad, vmem_cap, max_tile_n)
    assert tile_n % _LANES == 0, "tile_n must be a multiple of 128 (lane-aligned bidx tile)"

    tiles_per_split = _cdiv(rows_per_split, tile_n)
    n_pad = num_splits * tiles_per_split * tile_n
    n_total = n_pad

    # ---- wrapper-side layout plumbing (bf16 first, pad only if needed) ----
    x_bf = x.astype(jnp.bfloat16)
    if n_pad != n or e_pad != e:
        x_bf = jnp.pad(x_bf, ((0, n_pad - n), (0, e_pad - e)))
    # Padded nodes get graph id -1 -> never match any row of the in-kernel one-hot.
    bidx_p = jnp.full((1, n_pad), -1, dtype=jnp.int32)
    bidx_p = bidx_p.at[0, :n].set(batch_idx.astype(jnp.int32))

    flat_params = []
    for i, (w, b) in enumerate(params[:-1]):
        scale = 1.0 if i == 0 else _SILU_SCALE          # fold ScaledSiLU scale into next W
        w_s = (w * scale).astype(jnp.float32)
        if e_pad != e:
            w_s = jnp.zeros((e_pad, e_pad), jnp.float32).at[:e, :e].set(w_s)
        b_p = jnp.zeros((1, e_pad), jnp.float32).at[:, :e].set(jnp.reshape(b, (1, -1)))
        flat_params += [w_s.astype(jnp.bfloat16), b_p]
    w4, b4 = params[-1]
    w4_p = jnp.zeros((e_pad, _LANES), jnp.float32).at[:e, 0:1].set(w4 * _SILU_SCALE)
    b4_p = jnp.zeros((1, _LANES), jnp.float32).at[:, 0:1].set(jnp.reshape(b4, (1, 1)))
    flat_params += [w4_p, b4_p]

    # ---- VMEM budget (double-buffered streams + resident weights/accumulators),
    # clamped below the per-generation VMEM capacity (64 MiB on v7x). ----
    vmem_bytes = (
        2 * tile_n * e_pad * 2                         # x tile (bf16), double-buffered
        + 2 * tile_n * 4                               # batch-idx tile (int32)
        + 2 * (4 * e_pad * e_pad * 2 + 4 * e_pad * 4)  # hidden weights (bf16) + biases (f32)
        + 2 * (e_pad * _LANES * 4 + _LANES * 4)        # final weight/bias (f32)
        + b_pad * e_pad * 4 + b_pad * _LANES * 4       # accumulator scratch
        + 2 * b_pad * _LANES * 4                       # resident output slab
    )
    vmem_limit = int(min(vmem_cap - (2 << 20),
                         max(32 * 1024 * 1024, int(1.5 * vmem_bytes) + (2 << 20))))

    cost = pl.CostEstimate(
        flops=int(2 * n_total * e_pad * e_pad * 4            # 4 hidden layers
                  + 2 * n_total * b_pad * e_pad               # one-hot pooling
                  + 2 * num_splits * b_pad * e_pad * _LANES), # final projection
        transcendentals=int(4 * n_total * e_pad),             # one tanh per hidden element
        bytes_accessed=int(n_total * e_pad * 2 + n_total * 4
                           + 4 * e_pad * e_pad * 2 + 4 * e_pad * 4
                           + e_pad * _LANES * 4 + _LANES * 4
                           + num_splits * b_pad * _LANES * 4),
    )

    in_specs = [
        # x: streamed over nodes; split c owns tiles [c*tiles_per_split, ...).
        pl.BlockSpec((tile_n, e_pad), lambda c, i: (c * tiles_per_split + i, 0)),
        pl.BlockSpec((1, tile_n), lambda c, i: (0, c * tiles_per_split + i)),
    ] + [pl.BlockSpec(p.shape, lambda c, i: (0, 0)) for p in flat_params]   # weights resident

    kernel = functools.partial(_graph_binary_cls_head_kernel, bf16_act=bool(bf16_act))

    out = pl.pallas_call(
        kernel,
        out_shape=jax.ShapeDtypeStruct((num_splits, b_pad, _LANES), jnp.float32),
        grid_spec=pltpu.PrefetchScalarGridSpec(
            num_scalar_prefetch=0,
            grid=(num_splits, tiles_per_split),
            in_specs=in_specs,
            out_specs=pl.BlockSpec((None, b_pad, _LANES), lambda c, i: (c, 0, 0)),
            scratch_shapes=[
                pltpu.VMEM((b_pad, e_pad), jnp.float32),   # pooled accumulator
                pltpu.VMEM((b_pad, _LANES), jnp.float32),  # per-graph node counts
            ],
        ),
        compiler_params=pltpu.CompilerParams(
            dimension_semantics=("parallel", "arbitrary"),  # cores x node-tile reduction
            vmem_limit_bytes=vmem_limit,
        ),
        cost_estimate=cost,
    )(x_bf, bidx_p, *flat_params)

    # Combine per-core partial score slabs (exact: final layer is linear),
    # then rearrange 'b 1 -> b'.
    return jnp.sum(out, axis=0)[:num_graphs, 0]


# ----------------------------- references -----------------------------------
def _reference_f32(x, batch_idx, params, num_graphs):
    """True module semantics in f32 (MLP + ScaledSiLU + scatter-sum)."""
    h = x.astype(jnp.float32)
    for i, (w, b) in enumerate(params):
        h = h @ w + b
        if i < len(params) - 1:
            h = h * jax.nn.sigmoid(h) * _SILU_SCALE
    return jax.ops.segment_sum(h[:, 0], batch_idx, num_segments=num_graphs)


def _reference_kernel_precision(x, batch_idx, params, num_graphs, *, bf16_act):
    """Pure-JAX mirror of the kernel's precision choices (bf16 matmuls, f32 acc,
    tanh-form SiLU, optional bf16 activation)."""
    h = x.astype(jnp.bfloat16)
    for i, (w, b) in enumerate(params[:-1]):
        scale = 1.0 if i == 0 else _SILU_SCALE
        z = jnp.dot(h, (w * scale).astype(jnp.bfloat16),
                    preferred_element_type=jnp.float32) + jnp.reshape(b, (1, -1))
        if bf16_act:
            zb = z.astype(jnp.bfloat16)
            h = ((0.5 * zb) * (1.0 + jnp.tanh(0.5 * zb))).astype(jnp.bfloat16)
        else:
            h = ((0.5 * z) * (1.0 + jnp.tanh(0.5 * z))).astype(jnp.bfloat16)
    pooled = jax.ops.segment_sum(h.astype(jnp.float32), batch_idx, num_segments=num_graphs)
    counts = jax.ops.segment_sum(jnp.ones((x.shape[0],), jnp.float32), batch_idx,
                                 num_segments=num_graphs)
    w4, b4 = params[-1]
    return (pooled @ (w4 * _SILU_SCALE) + counts[:, None] * jnp.reshape(b4, (1, 1)))[:, 0]


if __name__ == "__main__":
    # Small shapes implied by the module: N atoms, E = backbone.emb_size_atom,
    # B molecules (n_molecules = max(data.batch) + 1). E is a lane multiple
    # (production JMP uses 256) so no lane-padding tax is paid; N=250 with
    # tile_n=128 exercises multiple node tiles plus tail padding.
    N, E, B = 250, 128, 8
    TILE_N = 128

    key = jax.random.PRNGKey(0)
    keys = jax.random.split(key, 2 + 2 * NUM_MLPS)

    x = jax.random.normal(keys[0], (N, E), dtype=jnp.float32)          # backbone_output['energy']
    batch_idx = jax.random.randint(keys[1], (N,), 0, B).astype(jnp.int32)  # data.batch

    # Deterministic parameter init (nn.Linear-style uniform fan-in bounds).
    dims = [E] * NUM_MLPS + [1]
    params = []
    for i in range(NUM_MLPS):
        bound = 1.0 / np.sqrt(dims[i])
        w = jax.random.uniform(keys[2 + 2 * i], (dims[i], dims[i + 1]),
                               jnp.float32, -bound, bound)
        b = jax.random.uniform(keys[3 + 2 * i], (1, dims[i + 1]),
                               jnp.float32, -bound, bound)
        params.append((w, b))

    bf16_act = _default_bf16_act()
    out = graph_binary_classification_head(x, batch_idx, params, B,
                                           tile_n=TILE_N, bf16_act=bf16_act)
    out = jax.block_until_ready(out)
    assert out.shape == (B,)

    ref_mirror = _reference_kernel_precision(x, batch_idx, params, B, bf16_act=bf16_act)
    ref_f32 = _reference_f32(x, batch_idx, params, B)
    # Tight-ish check vs a reference with identical precision choices.
    np.testing.assert_allclose(np.asarray(out), np.asarray(ref_mirror), rtol=2e-2, atol=5e-2)
    # Loose check vs the true f32 module semantics (bf16 quantization gap).
    np.testing.assert_allclose(np.asarray(out), np.asarray(ref_f32), rtol=5e-2, atol=0.5)

    print("KERNEL_OK")
</pallas_src>

<mosaic_0001>
module attributes {stable_mosaic.version = 11 : i64} {
  func.func @_graph_binary_cls_head_kernel(%arg0: i32, %arg1: i32, %arg2: memref<128x128xbf16, #tpu.memory_space<vmem>>, %arg3: memref<1x128xi32, #tpu.memory_space<vmem>>, %arg4: memref<128x128xbf16, #tpu.memory_space<vmem>>, %arg5: memref<1x128xf32, #tpu.memory_space<vmem>>, %arg6: memref<128x128xbf16, #tpu.memory_space<vmem>>, %arg7: memref<1x128xf32, #tpu.memory_space<vmem>>, %arg8: memref<128x128xbf16, #tpu.memory_space<vmem>>, %arg9: memref<1x128xf32, #tpu.memory_space<vmem>>, %arg10: memref<128x128xbf16, #tpu.memory_space<vmem>>, %arg11: memref<1x128xf32, #tpu.memory_space<vmem>>, %arg12: memref<128x128xf32, #tpu.memory_space<vmem>>, %arg13: memref<1x128xf32, #tpu.memory_space<vmem>>, %arg14: memref<1x8x128xf32, #tpu.memory_space<vmem>>, %arg15: memref<8x128xf32, #tpu.memory_space<vmem>>, %arg16: memref<8x128xf32, #tpu.memory_space<vmem>>) attributes {dimension_semantics = [#tpu.dimension_semantics<parallel>, #tpu.dimension_semantics<arbitrary>], iteration_bounds = array<i64: 1, 2>, scalar_prefetch = 0 : i64, scratch_operands = 2 : i64, tpu.core_type = #tpu.core_type<tc>, window_params = [{transform_indices = @transform_0, window_bounds = array<i64: 128, 128>}, {transform_indices = @transform_1, window_bounds = array<i64: 1, 128>}, {pipeline_mode = #tpu.pipeline_mode<synchronous>, transform_indices = @transform_2, window_bounds = array<i64: 128, 128>}, {pipeline_mode = #tpu.pipeline_mode<synchronous>, transform_indices = @transform_3, window_bounds = array<i64: 1, 128>}, {pipeline_mode = #tpu.pipeline_mode<synchronous>, transform_indices = @transform_4, window_bounds = array<i64: 128, 128>}, {pipeline_mode = #tpu.pipeline_mode<synchronous>, transform_indices = @transform_5, window_bounds = array<i64: 1, 128>}, {pipeline_mode = #tpu.pipeline_mode<synchronous>, transform_indices = @transform_6, window_bounds = array<i64: 128, 128>}, {pipeline_mode = #tpu.pipeline_mode<synchronous>, transform_indices = @transform_7, window_bounds = array<i64: 1, 128>}, {pipeline_mode = #tpu.pipeline_mode<synchronous>, transform_indices = @transform_8, window_bounds = array<i64: 128, 128>}, {pipeline_mode = #tpu.pipeline_mode<synchronous>, transform_indices = @transform_9, window_bounds = array<i64: 1, 128>}, {pipeline_mode = #tpu.pipeline_mode<synchronous>, transform_indices = @transform_10, window_bounds = array<i64: 128, 128>}, {pipeline_mode = #tpu.pipeline_mode<synchronous>, transform_indices = @transform_11, window_bounds = array<i64: 1, 128>}, {transform_indices = @transform_12, window_bounds = array<i64: 1, 8, 128>}]} {
    %c0_i32 = arith.constant 0 : i32
    %0 = arith.cmpi eq, %arg1, %c0_i32 : i32
    %1 = arith.extui %0 : i1 to i32
    %c0_i32_0 = arith.constant 0 : i32
    %2 = arith.cmpi ne, %1, %c0_i32_0 : i32
    scf.if %2 {
      %cst_46 = arith.constant 0.000000e+00 : f32
      %81 = vector.broadcast %cst_46 : f32 to vector<8x128xf32>
      %c0_47 = arith.constant 0 : index
      %c0_48 = arith.constant 0 : index
      %82 = vector.load %arg15[%c0_47, %c0_48] : memref<8x128xf32, #tpu.memory_space<vmem>>, vector<8x128xf32>
      tpu.vector_store %arg15[%c0_47, %c0_48], %81 {strides = array<i32>} : memref<8x128xf32, #tpu.memory_space<vmem>>, vector<8x128xf32>,
      %cst_49 = arith.constant 0.000000e+00 : f32
      %83 = vector.broadcast %cst_49 : f32 to vector<8x128xf32>
      %c0_50 = arith.constant 0 : index
      %c0_51 = arith.constant 0 : index
      %84 = vector.load %arg16[%c0_50, %c0_51] : memref<8x128xf32, #tpu.memory_space<vmem>>, vector<8x128xf32>
      tpu.vector_store %arg16[%c0_50, %c0_51], %83 {strides = array<i32>} : memref<8x128xf32, #tpu.memory_space<vmem>>, vector<8x128xf32>,
    } else {
    }
    %c0 = arith.constant 0 : index
    %c0_1 = arith.constant 0 : index
    %3 = vector.load %arg2[%c0, %c0_1] : memref<128x128xbf16, #tpu.memory_space<vmem>>, vector<128x128xbf16>
    %c0_2 = arith.constant 0 : index
    %c0_3 = arith.constant 0 : index
    %4 = vector.load %arg4[%c0_2, %c0_3] : memref<128x128xbf16, #tpu.memory_space<vmem>>, vector<128x128xbf16>
    %cst = arith.constant dense<0.000000e+00> : vector<128x128xf32>
    %5 = tpu.matmul %3, %4, %cst {dimension_numbers = #tpu.dot_dimension_numbers<[1], [0], [0], [1], [0, 0, 1, 1], [], []>} : vector<128x128xbf16>, vector<128x128xbf16>, vector<128x128xf32> -> vector<128x128xf32>
    %c0_4 = arith.constant 0 : index
    %c0_5 = arith.constant 0 : index
    %6 = vector.load %arg5[%c0_4, %c0_5] : memref<1x128xf32, #tpu.memory_space<vmem>>, vector<1x128xf32>
    %7 = vector.broadcast %6 : vector<1x128xf32> to vector<128x128xf32>
    %8 = arith.addf %5, %7 : vector<128x128xf32>
    %9 = arith.truncf %8 : vector<128x128xf32> to vector<128x128xbf16>
    %cst_6 = arith.constant 5.000000e-01 : bf16
    %10 = vector.broadcast %cst_6 : bf16 to vector<128x128xbf16>
    %11 = arith.mulf %10, %9 : vector<128x128xbf16>
    %cst_7 = arith.constant 5.000000e-01 : bf16
    %12 = vector.broadcast %cst_7 : bf16 to vector<128x128xbf16>
    %13 = arith.mulf %12, %9 : vector<128x128xbf16>
    %14 = math.tanh %13 : vector<128x128xbf16>
    %cst_8 = arith.constant 1.000000e+00 : bf16
    %15 = vector.broadcast %cst_8 : bf16 to vector<128x128xbf16>
    %16 = arith.addf %15, %14 : vector<128x128xbf16>
    %17 = arith.mulf %11, %16 : vector<128x128xbf16>
    %c0_9 = arith.constant 0 : index
    %c0_10 = arith.constant 0 : index
    %18 = vector.load %arg6[%c0_9, %c0_10] : memref<128x128xbf16, #tpu.memory_space<vmem>>, vector<128x128xbf16>
    %cst_11 = arith.constant dense<0.000000e+00> : vector<128x128xf32>
    %19 = tpu.matmul %17, %18, %cst_11 {dimension_numbers = #tpu.dot_dimension_numbers<[1], [0], [0], [1], [0, 0, 1, 1], [], []>} : vector<128x128xbf16>, vector<128x128xbf16>, vector<128x128xf32> -> vector<128x128xf32>
    %c0_12 = arith.constant 0 : index
    %c0_13 = arith.constant 0 : index
    %20 = vector.load %arg7[%c0_12, %c0_13] : memref<1x128xf32, #tpu.memory_space<vmem>>, vector<1x128xf32>
    %21 = vector.broadcast %20 : vector<1x128xf32> to vector<128x128xf32>
    %22 = arith.addf %19, %21 : vector<128x128xf32>
    %23 = arith.truncf %22 : vector<128x128xf32> to vector<128x128xbf16>
    %cst_14 = arith.constant 5.000000e-01 : bf16
    %24 = vector.broadcast %cst_14 : bf16 to vector<128x128xbf16>
    %25 = arith.mulf %24, %23 : vector<128x128xbf16>
    %cst_15 = arith.constant 5.000000e-01 : bf16
    %26 = vector.broadcast %cst_15 : bf16 to vector<128x128xbf16>
    %27 = arith.mulf %26, %23 : vector<128x128xbf16>
    %28 = math.tanh %27 : vector<128x128xbf16>
    %cst_16 = arith.constant 1.000000e+00 : bf16
    %29 = vector.broadcast %cst_16 : bf16 to vector<128x128xbf16>
    %30 = arith.addf %29, %28 : vector<128x128xbf16>
    %31 = arith.mulf %25, %30 : vector<128x128xbf16>
    %c0_17 = arith.constant 0 : index
    %c0_18 = arith.constant 0 : index
    %32 = vector.load %arg8[%c0_17, %c0_18] : memref<128x128xbf16, #tpu.memory_space<vmem>>, vector<128x128xbf16>
    %cst_19 = arith.constant dense<0.000000e+00> : vector<128x128xf32>
    %33 = tpu.matmul %31, %32, %cst_19 {dimension_numbers = #tpu.dot_dimension_numbers<[1], [0], [0], [1], [0, 0, 1, 1], [], []>} : vector<128x128xbf16>, vector<128x128xbf16>, vector<128x128xf32> -> vector<128x128xf32>
    %c0_20 = arith.constant 0 : index
    %c0_21 = arith.constant 0 : index
    %34 = vector.load %arg9[%c0_20, %c0_21] : memref<1x128xf32, #tpu.memory_space<vmem>>, vector<1x128xf32>
    %35 = vector.broadcast %34 : vector<1x128xf32> to vector<128x128xf32>
    %36 = arith.addf %33, %35 : vector<128x128xf32>
    %37 = arith.truncf %36 : vector<128x128xf32> to vector<128x128xbf16>
    %cst_22 = arith.constant 5.000000e-01 : bf16
    %38 = vector.broadcast %cst_22 : bf16 to vector<128x128xbf16>
    %39 = arith.mulf %38, %37 : vector<128x128xbf16>
    %cst_23 = arith.constant 5.000000e-01 : bf16
    %40 = vector.broadcast %cst_23 : bf16 to vector<128x128xbf16>
    %41 = arith.mulf %40, %37 : vector<128x128xbf16>
    %42 = math.tanh %41 : vector<128x128xbf16>
    %cst_24 = arith.constant 1.000000e+00 : bf16
    %43 = vector.broadcast %cst_24 : bf16 to vector<128x128xbf16>
    %44 = arith.addf %43, %42 : vector<128x128xbf16>
    %45 = arith.mulf %39, %44 : vector<128x128xbf16>
    %c0_25 = arith.constant 0 : index
    %c0_26 = arith.constant 0 : index
    %46 = vector.load %arg10[%c0_25, %c0_26] : memref<128x128xbf16, #tpu.memory_space<vmem>>, vector<128x128xbf16>
    %cst_27 = arith.constant dense<0.000000e+00> : vector<128x128xf32>
    %47 = tpu.matmul %45, %46, %cst_27 {dimension_numbers = #tpu.dot_dimension_numbers<[1], [0], [0], [1], [0, 0, 1, 1], [], []>} : vector<128x128xbf16>, vector<128x128xbf16>, vector<128x128xf32> -> vector<128x128xf32>
    %c0_28 = arith.constant 0 : index
    %c0_29 = arith.constant 0 : index
    %48 = vector.load %arg11[%c0_28, %c0_29] : memref<1x128xf32, #tpu.memory_space<vmem>>, vector<1x128xf32>
    %49 = vector.broadcast %48 : vector<1x128xf32> to vector<128x128xf32>
    %50 = arith.addf %47, %49 : vector<128x128xf32>
    %51 = arith.truncf %50 : vector<128x128xf32> to vector<128x128xbf16>
    %cst_30 = arith.constant 5.000000e-01 : bf16
    %52 = vector.broadcast %cst_30 : bf16 to vector<128x128xbf16>
    %53 = arith.mulf %52, %51 : vector<128x128xbf16>
    %cst_31 = arith.constant 5.000000e-01 : bf16
    %54 = vector.broadcast %cst_31 : bf16 to vector<128x128xbf16>
    %55 = arith.mulf %54, %51 : vector<128x128xbf16>
    %56 = math.tanh %55 : vector<128x128xbf16>
    %cst_32 = arith.constant 1.000000e+00 : bf16
    %57 = vector.broadcast %cst_32 : bf16 to vector<128x128xbf16>
    %58 = arith.addf %57, %56 : vector<128x128xbf16>
    %59 = arith.mulf %53, %58 : vector<128x128xbf16>
    %60 = tpu.iota {dimensions = array<i32: 0>} : vector<8x128xi32>
    %c0_33 = arith.constant 0 : index
    %c0_34 = arith.constant 0 : index
    %61 = vector.load %arg3[%c0_33, %c0_34] : memref<1x128xi32, #tpu.memory_space<vmem>>, vector<1x128xi32>
    %62 = vector.broadcast %61 : vector<1x128xi32> to vector<8x128xi32>
    %63 = arith.cmpi eq, %60, %62 : vector<8x128xi32>
    %64 = arith.extui %63 : vector<8x128xi1> to vector<8x128xi32>
    %65 = arith.sitofp %64 : vector<8x128xi32> to vector<8x128xf32>
    %66 = arith.truncf %65 : vector<8x128xf32> to vector<8x128xbf16>
    %c0_35 = arith.constant 0 : index
    %c0_36 = arith.constant 0 : index
    %67 = vector.load %arg15[%c0_35, %c0_36] : memref<8x128xf32, #tpu.memory_space<vmem>>, vector<8x128xf32>
    %cst_37 = arith.constant dense<0.000000e+00> : vector<8x128xf32>
    %68 = tpu.matmul %66, %59, %cst_37 {dimension_numbers = #tpu.dot_dimension_numbers<[1], [0], [0], [1], [0, 0, 1, 1], [], []>} : vector<8x128xbf16>, vector<128x128xbf16>, vector<8x128xf32> -> vector<8x128xf32>
    %69 = arith.addf %67, %68 : vector<8x128xf32>
    %c0_38 = arith.constant 0 : index
    %c0_39 = arith.constant 0 : index
    %70 = vector.load %arg15[%c0_38, %c0_39] : memref<8x128xf32, #tpu.memory_space<vmem>>, vector<8x128xf32>
    tpu.vector_store %arg15[%c0_38, %c0_39], %69 {strides = array<i32>} : memref<8x128xf32, #tpu.memory_space<vmem>>, vector<8x128xf32>,
    %c0_40 = arith.constant 0 : index
    %c0_41 = arith.constant 0 : index
    %71 = vector.load %arg16[%c0_40, %c0_41] : memref<8x128xf32, #tpu.memory_space<vmem>>, vector<8x128xf32>
    %72 = arith.extf %66 : vector<8x128xbf16> to vector<8x128xf32>
    %cst_42 = arith.constant dense<0.000000e+00> : vector<8xf32>
    %73 = vector.multi_reduction <add>, %72, %cst_42 [1] : vector<8x128xf32> to vector<8xf32>
    %74 = vector.shape_cast %73 : vector<8xf32> to vector<8x1xf32>
    %75 = vector.broadcast %74 : vector<8x1xf32> to vector<8x128xf32>
    %76 = arith.addf %71, %75 : vector<8x128xf32>
    %c0_43 = arith.constant 0 : index
    %c0_44 = arith.constant 0 : index
    %77 = vector.load %arg16[%c0_43, %c0_44] : memref<8x128xf32, #tpu.memory_space<vmem>>, vector<8x128xf32>
    tpu.vector_store %arg16[%c0_43, %c0_44], %76 {strides = array<i32>} : memref<8x128xf32, #tpu.memory_space<vmem>>, vector<8x128xf32>,
    %c1_i32 = arith.constant 1 : i32
    %78 = arith.cmpi eq, %arg1, %c1_i32 : i32
    %79 = arith.extui %78 : i1 to i32
    %c0_i32_45 = arith.constant 0 : i32
    %80 = arith.cmpi ne, %79, %c0_i32_45 : i32
    scf.if %80 {
      %c0_46 = arith.constant 0 : index
      %c0_47 = arith.constant 0 : index
      %81 = vector.load %arg15[%c0_46, %c0_47] : memref<8x128xf32, #tpu.memory_space<vmem>>, vector<8x128xf32>
      %c0_48 = arith.constant 0 : index
      %c0_49 = arith.constant 0 : index
      %82 = vector.load %arg12[%c0_48, %c0_49] : memref<128x128xf32, #tpu.memory_space<vmem>>, vector<128x128xf32>
      %cst_50 = arith.constant dense<0.000000e+00> : vector<8x128xf32>
      %83 = tpu.matmul %81, %82, %cst_50 {dimension_numbers = #tpu.dot_dimension_numbers<[1], [0], [0], [1], [0, 0, 1, 1], [], []>} : vector<8x128xf32>, vector<128x128xf32>, vector<8x128xf32> -> vector<8x128xf32>
      %c0_51 = arith.constant 0 : index
      %c0_52 = arith.constant 0 : index
      %84 = vector.load %arg16[%c0_51, %c0_52] : memref<8x128xf32, #tpu.memory_space<vmem>>, vector<8x128xf32>
      %c0_53 = arith.constant 0 : index
      %c0_54 = arith.constant 0 : index
      %85 = vector.load %arg13[%c0_53, %c0_54] : memref<1x128xf32, #tpu.memory_space<vmem>>, vector<1x128xf32>
      %86 = vector.broadcast %85 : vector<1x128xf32> to vector<8x128xf32>
      %87 = arith.mulf %84, %86 : vector<8x128xf32>
      %88 = arith.addf %83, %87 : vector<8x128xf32>
      %c0_55 = arith.constant 0 : index
      %c0_56 = arith.constant 0 : index
      %c0_57 = arith.constant 0 : index
      %89 = vector.load %arg14[%c0_55, %c0_56, %c0_57] : memref<1x8x128xf32, #tpu.memory_space<vmem>>, vector<1x8x128xf32>
      %90 = vector.shape_cast %89 : vector<1x8x128xf32> to vector<8x128xf32>
      %91 = vector.shape_cast %88 : vector<8x128xf32> to vector<1x8x128xf32>
      tpu.vector_store %arg14[%c0_55, %c0_56, %c0_57], %91 {strides = array<i32>} : memref<1x8x128xf32, #tpu.memory_space<vmem>>, vector<1x8x128xf32>,
    } else {
    }
    return
  }
  func.func @transform_0(%arg0: i32, %arg1: i32) -> (i32, i32) {
    %c2_i32 = arith.constant 2 : i32
    %0 = arith.muli %arg0, %c2_i32 : i32
    %1 = arith.addi %0, %arg1 : i32
    %c0_i32 = arith.constant 0 : i32
    %c0_i32_0 = arith.constant 0 : i32
    return %1, %c0_i32 : i32, i32
  }
  func.func @transform_1(%arg0: i32, %arg1: i32) -> (i32, i32) {
    %c2_i32 = arith.constant 2 : i32
    %0 = arith.muli %arg0, %c2_i32 : i32
    %1 = arith.addi %0, %arg1 : i32
    %c0_i32 = arith.constant 0 : i32
    %c0_i32_0 = arith.constant 0 : i32
    return %c0_i32, %1 : i32, i32
  }
  func.func @transform_2(%arg0: i32, %arg1: i32) -> (i32, i32) {
    %c0_i32 = arith.constant 0 : i32
    %c0_i32_0 = arith.constant 0 : i32
    %c0_i32_1 = arith.constant 0 : i32
    return %c0_i32, %c0_i32_0 : i32, i32
  }
  func.func @transform_3(%arg0: i32, %arg1: i32) -> (i32, i32) {
    %c0_i32 = arith.constant 0 : i32
    %c0_i32_0 = arith.constant 0 : i32
    %c0_i32_1 = arith.constant 0 : i32
    return %c0_i32, %c0_i32_0 : i32, i32
  }
  func.func @transform_4(%arg0: i32, %arg1: i32) -> (i32, i32) {
    %c0_i32 = arith.constant 0 : i32
    %c0_i32_0 = arith.constant 0 : i32
    %c0_i32_1 = arith.constant 0 : i32
    return %c0_i32, %c0_i32_0 : i32, i32
  }
  func.func @transform_5(%arg0: i32, %arg1: i32) -> (i32, i32) {
    %c0_i32 = arith.constant 0 : i32
    %c0_i32_0 = arith.constant 0 : i32
    %c0_i32_1 = arith.constant 0 : i32
    return %c0_i32, %c0_i32_0 : i32, i32
  }
  func.func @transform_6(%arg0: i32, %arg1: i32) -> (i32, i32) {
    %c0_i32 = arith.constant 0 : i32
    %c0_i32_0 = arith.constant 0 : i32
    %c0_i32_1 = arith.constant 0 : i32
    return %c0_i32, %c0_i32_0 : i32, i32
  }
  func.func @transform_7(%arg0: i32, %arg1: i32) -> (i32, i32) {
    %c0_i32 = arith.constant 0 : i32
    %c0_i32_0 = arith.constant 0 : i32
    %c0_i32_1 = arith.constant 0 : i32
    return %c0_i32, %c0_i32_0 : i32, i32
  }
  func.func @transform_8(%arg0: i32, %arg1: i32) -> (i32, i32) {
    %c0_i32 = arith.constant 0 : i32
    %c0_i32_0 = arith.constant 0 : i32
    %c0_i32_1 = arith.constant 0 : i32
    return %c0_i32, %c0_i32_0 : i32, i32
  }
  func.func @transform_9(%arg0: i32, %arg1: i32) -> (i32, i32) {
    %c0_i32 = arith.constant 0 : i32
    %c0_i32_0 = arith.constant 0 : i32
    %c0_i32_1 = arith.constant 0 : i32
    return %c0_i32, %c0_i32_0 : i32, i32
  }
  func.func @transform_10(%arg0: i32, %arg1: i32) -> (i32, i32) {
    %c0_i32 = arith.constant 0 : i32
    %c0_i32_0 = arith.constant 0 : i32
    %c0_i32_1 = arith.constant 0 : i32
    return %c0_i32, %c0_i32_0 : i32, i32
  }
  func.func @transform_11(%arg0: i32, %arg1: i32) -> (i32, i32) {
    %c0_i32 = arith.constant 0 : i32
    %c0_i32_0 = arith.constant 0 : i32
    %c0_i32_1 = arith.constant 0 : i32
    return %c0_i32, %c0_i32_0 : i32, i32
  }
  func.func @transform_12(%arg0: i32, %arg1: i32) -> (i32, i32, i32) {
    %c0_i32 = arith.constant 0 : i32
    %c0_i32_0 = arith.constant 0 : i32
    %c0_i32_1 = arith.constant 0 : i32
    return %arg0, %c0_i32, %c0_i32_0 : i32, i32, i32
  }
}

</mosaic_0001>

<bundles_post_ra>
// kernel: tpu_custom_call.1
= control target key start
LH: loop header
LB: loop body
LE: loop exit
PB: predicated region body
PF: predicated region fallthrough
CT: control target
= control target key end

     0   :  { %s3063_s0 = inlined_call_operand.hbm [shape: bf16[256,128], index: 0, kind: input, shape index: {}]   ;;  %s3064_s1 = inlined_call_operand.vmem [shape: s32[1,256], index: 1, kind: input, shape index: {}]   ;;  %s3065_s2 = inlined_call_operand.hbm [shape: bf16[128,128], index: 2, kind: input, shape index: {}]   ;;  %s3066_s3 = inlined_call_operand.vmem [shape: f32[1,128], index: 3, kind: input, shape index: {}]   ;;  %s3067_s4 = inlined_call_operand.hbm [shape: bf16[128,128], index: 4, kind: input, shape index: {}]   ;;  %s3068_s5 = inlined_call_operand.vmem [shape: f32[1,128], index: 5, kind: input, shape index: {}]   ;;  %s3069_s6 = inlined_call_operand.hbm [shape: bf16[128,128], index: 6, kind: input, shape index: {}]   ;;  %s3070_s7 = inlined_call_operand.vmem [shape: f32[1,128], index: 7, kind: input, shape index: {}]   ;;  %s3071_s8 = inlined_call_operand.hbm [shape: bf16[128,128], index: 8, kind: input, shape index: {}]   ;;  %s3072_s9 = inlined_call_operand.vmem [shape: f32[1,128], index: 9, kind: input, shape index: {}]   ;;  %s3073_s10 = inlined_call_operand.hbm [shape: f32[128,128], index: 10, kind: input, shape index: {}]   ;;  %s3074_s11 = inlined_call_operand.vmem [shape: f32[1,128], index: 11, kind: input, shape index: {}]   ;;  %s3075_s12 = inlined_call_operand.hbm [shape: f32[1,8,128], index: 12, kind: output, shape index: {}]  }
   0x1   :  { %3081 = sst [smem:[#allocation21_spill]] %s3065_s2 }
   0x2   :  { %3082 = sst [smem:[#allocation22_spill]] %s3066_s3 }
   0x3   :  { %3083 = sst [smem:[#allocation23_spill]] %s3068_s5 }
   0x4   :  { %3084 = sst [smem:[#allocation24_spill]] %s3070_s7 }
   0x5   :  { %3085 = sst [smem:[#allocation25_spill]] %s3072_s9 }
   0x6   :  { %3086 = sst [smem:[#allocation26_spill]] %s3074_s11 }
   0x7   :  { %3087 = sst [smem:[#allocation27_spill]] %s3075_s12 }
   0x8   :  { %17 = vsyncpa [#allocation5], 0 }
   0x9   :  { %19 = vsyncpa [#allocation5 + $0x1], 0 }
   0xa   :  { %20 = vsyncpa [#allocation8], 0 }
   0xb   :  { %21 = vsyncpa [#allocation11], 0 }
   0xc   :  { %22 = vsyncpa [#allocation14], 0 }
   0xd   :  { %23 = vsyncpa [#allocation6], 0  ;;  %s2688_s21 = smov 0   ;;  %s2690_s22 = smov 0  }
   0xe   :  { %s2692_s23 = smov 0   ;;  %s2694_s24 = smov 0  }
   0xf   :  { %s2696_s25 = smov 0   ;;  %s2698_s26 = smov 0  }
  0x10 LB: > { %s3076_s27 = sadd.s32 4294967295, %s2603_s26   ;;  %p1743_p0 = scmp.ge.s32.totalorder %s2603_s26, 1  ;;  %s2603_s26 = sphi %s2698_s26, %s29_s26   ;;  %s2599_s25 = sphi %s2696_s25, %s3111_s25   ;;  %s2595_s24 = sphi %s2694_s24, %s3110_s24   ;;  %s2591_s23 = sphi %s2692_s23, %s3109_s23   ;;  %s2587_s22 = sphi %s2690_s22, %s3108_s22   ;;  %s2583_s21 = sphi %s2688_s21, %s3107_s21  }
  0x11   : > { %p2722_p1 = scmp.eq.s32.totalorder %s3076_s27, 0  ;;  %p342_p2 = scmp.lt.s32.totalorder %s2603_s26, 3 }
  0x12   : > { %s2605_s30 = smov [#allocation7]   ;;  %s2606_s15 = smov [#allocation10]  }
  0x13   : > { %s3088_s28 = scalar_select %p2722_p1, 1, 0 }
  0x14   : > { %p2727_p3 = pnand %p1743_p0, %p342_p2  ;;  %s354_s13 = sshll.u32 %s2605_s30, 4  ;;  %s2731_s13 = int_to_ptr.vmem [resolvable:$true] %s354_s13 }
  0x15   : > { %s386_s16 = sshll.u32 %s2606_s15, 4  ;;  %s2607_s17 = smov [#allocation9]   ;;  %s2741_s16 = int_to_ptr.vmem [resolvable:$true] %s386_s16 }
  0x16   : > { %s3089_s29 = scalar_select %p2727_p3, 1, 0 }
  0x17   : > { %p2139_p4 = pneg %p2727_p3  ;;  %s2743_s18 = sshll.u32 %s2607_s17, 4  ;;  %s371_s18 = int_to_ptr.vmem [resolvable:$true] %s2743_s18 }
  0x18   : > { %s3091_s2 = sld [smem:[#allocation21_spill]] }
  0x19   : > { %p2737_p5 = pnand %p2139_p4, %p2722_p1 }
  0x1b   : > { %p2753_p7 = pneg %p2737_p5 }
  0x1e   : > { %s2341_s30 = scalar_lea.hbm %s3091_s2, 1024 }
  0x1f   : > { %p2342_p6 = scmp.ne.s32.totalorder %s3091_s2, %s2341_s30  ;;  %p2348_p10 = scmp.lt.u32.totalorder %s2341_s30, %s3091_s2 }
  0x21   : > { %p2344_p8 = pnand %p2753_p7, %p2342_p6 }
  0x23   : > { %p2345_p9 = pneg %p2344_p8 }
  0x25   : > { %p2350_p11 = pnand %p2348_p10, %p2345_p9 }
  0x27   : > { %2353 = shalt.err (!%p2350_p11)
}
  0x28   : > { %s2354_s12 = scalar_lea.vmem %s2731_s13, 1024  ;;  %p2362_p2 = scmp.lt.s32.totalorder %s2731_s13, %s2731_s13 }
  0x29   : > { %p2355_p12 = scmp.ne.s32.totalorder %s2731_s13, %s2354_s12  ;;  %p2363_p4 = scmp.lt.s32.totalorder %s2354_s12, %s2354_s12 }
  0x2b   : > { %p2357_p13 = pnand %p2355_p12, %p2753_p7  ;;  %p2364_p6 = por %p2363_p4, %p2362_p2 }
  0x2d   : > { %p2358_p0 = pneg %p2357_p13 }
  0x2f   : > { %p2365_p8 = pnand %p2364_p6, %p2358_p0 }
  0x31   : > { %2368 = shalt.err (!%p2365_p8)
}
  0x32   : > { %s2608_s27 = smov 64   ;;  %s2609_s19 = smov 4  }
  0x33   : > { %2142 = dma.hbm_to_vmem [thread:$0]  (!%p2737_p5), %s3091_s2, 1024, %s2731_s13, [#allocation8], %s2608_s27, %s2608_s27, %s2609_s19  }
  0x34   : > { %s2369_s12 = scalar_lea.hbm %s3069_s6, 1024 }
  0x35   : > { %p2370_p9 = scmp.ne.s32.totalorder %s3069_s6, %s2369_s12  ;;  %p2376_p12 = scmp.lt.u32.totalorder %s2369_s12, %s3069_s6 }
  0x37   : > { %p2372_p10 = pnand %p2370_p9, %p2753_p7 }
  0x39   : > { %p2373_p11 = pneg %p2372_p10 }
  0x3b   : > { %p2378_p13 = pnand %p2376_p12, %p2373_p11 }
  0x3d   : > { %2381 = shalt.err (!%p2378_p13)
}
  0x3e   : > { %s2382_s13 = scalar_lea.vmem %s2741_s16, 1024  ;;  %p2390_p6 = scmp.lt.s32.totalorder %s2741_s16, %s2741_s16 }
  0x3f   : > { %p2383_p0 = scmp.ne.s32.totalorder %s2741_s16, %s2382_s13  ;;  %p2391_p8 = scmp.lt.s32.totalorder %s2382_s13, %s2382_s13 }
  0x41   : > { %p2385_p2 = pnand %p2383_p0, %p2753_p7  ;;  %p2392_p9 = por %p2391_p8, %p2390_p6 }
  0x43   : > { %p2386_p4 = pneg %p2385_p2 }
  0x45   : > { %p2393_p10 = pnand %p2392_p9, %p2386_p4 }
  0x47   : > { %2396 = shalt.err (!%p2393_p10)
}
  0x48   : > { %2148 = dma.hbm_to_vmem [thread:$0]  (!%p2737_p5), %s3069_s6, 1024, %s2741_s16, [#allocation11], %s2608_s27, %s2608_s27, %s2609_s19  }
  0x49   : > { %s2397_s20 = scalar_lea.hbm %s3067_s4, 1024 }
  0x4a   : > { %p2398_p11 = scmp.ne.s32.totalorder %s3067_s4, %s2397_s20  ;;  %p2404_p0 = scmp.lt.u32.totalorder %s2397_s20, %s3067_s4 }
  0x4c   : > { %p2400_p12 = pnand %p2398_p11, %p2753_p7 }
  0x4e   : > { %p2401_p13 = pneg %p2400_p12 }
  0x50   : > { %p2406_p2 = pnand %p2404_p0, %p2401_p13 }
  0x52   : > { %2409 = shalt.err (!%p2406_p2)
}
  0x53   : > { %s2410_s13 = scalar_lea.vmem %s371_s18, 1024  ;;  %p2418_p9 = scmp.lt.s32.totalorder %s371_s18, %s371_s18 }
  0x54   : > { %p2411_p4 = scmp.ne.s32.totalorder %s371_s18, %s2410_s13  ;;  %p2419_p10 = scmp.lt.s32.totalorder %s2410_s13, %s2410_s13 }
  0x56   : > { %p2413_p6 = pnand %p2411_p4, %p2753_p7  ;;  %p2420_p3 = por %p2419_p10, %p2418_p9 }
  0x58   : > { %p2414_p8 = pneg %p2413_p6 }
  0x5a   : > { %p2421_p1 = pnand %p2420_p3, %p2414_p8 }
  0x5c   : > { %2424 = shalt.err (!%p2421_p1)
}
  0x5d   : > { %2145 = dma.hbm_to_vmem [thread:$0]  (!%p2737_p5), %s3067_s4, 1024, %s371_s18, [#allocation8], %s2608_s27, %s2608_s27, %s2609_s19  }
  0x5e   : > { %s2610_s5 = smov [#allocation12]   ;;  %s2611_s9 = smov [#allocation13]  }
  0x5f   : > { %s402_s7 = sshll.u32 %s2610_s5, 4  ;;  %s418_s20 = sshll.u32 %s2611_s9, 4  ;;  %s403_s7 = int_to_ptr.vmem [resolvable:$true] %s402_s7  ;;  %s419_s20 = int_to_ptr.vmem [resolvable:$true] %s418_s20 }
  0x60   : > { %s2425_s17 = scalar_lea.hbm %s3071_s8, 1024 }
  0x61   : > { %p2426_p1 = scmp.ne.s32.totalorder %s3071_s8, %s2425_s17  ;;  %p2432_p12 = scmp.lt.u32.totalorder %s2425_s17, %s3071_s8 }
  0x63   : > { %p2428_p3 = pnand %p2426_p1, %p2753_p7 }
  0x65   : > { %p2429_p11 = pneg %p2428_p3 }
  0x67   : > { %p2434_p13 = pnand %p2432_p12, %p2429_p11 }
  0x69   : > { %2437 = shalt.err (!%p2434_p13)
}
  0x6a   : > { %s2438_s18 = scalar_lea.vmem %s403_s7, 1024  ;;  %p2446_p6 = scmp.lt.s32.totalorder %s403_s7, %s403_s7 }
  0x6b   : > { %p2439_p0 = scmp.ne.s32.totalorder %s403_s7, %s2438_s18  ;;  %p2447_p8 = scmp.lt.s32.totalorder %s2438_s18, %s2438_s18 }
  0x6d   : > { %p2441_p2 = pnand %p2439_p0, %p2753_p7  ;;  %p2448_p9 = por %p2447_p8, %p2446_p6 }
  0x6f   : > { %p2442_p4 = pneg %p2441_p2 }
  0x71   : > { %p2449_p10 = pnand %p2448_p9, %p2442_p4 }
  0x73   : > { %2452 = shalt.err (!%p2449_p10)
}
  0x74   : > { %2151 = dma.hbm_to_vmem [thread:$0]  (!%p2737_p5), %s3071_s8, 1024, %s403_s7, [#allocation11], %s2608_s27, %s2608_s27, %s2609_s19  }
  0x75   : > { %s2453_s30 = scalar_lea.hbm %s3073_s10, 2048 }
  0x76   : > { %p2454_p1 = scmp.ne.s32.totalorder %s3073_s10, %s2453_s30  ;;  %p2460_p12 = scmp.lt.u32.totalorder %s2453_s30, %s3073_s10 }
  0x78   : > { %p2456_p3 = pnand %p2454_p1, %p2753_p7 }
  0x7a   : > { %p2457_p11 = pneg %p2456_p3 }
  0x7c   : > { %p2462_p13 = pnand %p2460_p12, %p2457_p11 }
  0x7e   : > { %2465 = shalt.err (!%p2462_p13)
}
  0x7f   : > { %s2466_s16 = scalar_lea.vmem %s419_s20, 2048  ;;  %p2474_p6 = scmp.lt.s32.totalorder %s419_s20, %s419_s20 }
  0x80   : > { %p2467_p0 = scmp.ne.s32.totalorder %s419_s20, %s2466_s16  ;;  %p2475_p8 = scmp.lt.s32.totalorder %s2466_s16, %s2466_s16 }
  0x82   : > { %p2469_p2 = pnand %p2467_p0, %p2753_p7  ;;  %p2476_p9 = por %p2475_p8, %p2474_p6 }
  0x84   : > { %p2470_p4 = pneg %p2469_p2 }
  0x86   : > { %p2477_p10 = pnand %p2476_p9, %p2470_p4 }
  0x88   : > { %2480 = shalt.err (!%p2477_p10)
}
  0x89   : > { %s2612_s7 = smov 128   ;;  %s2613_s11 = smov 8  }
  0x8a   : > { %2154 = dma.hbm_to_vmem [thread:$0]  (!%p2737_p5), %s3073_s10, 2048, %s419_s20, [#allocation14], %s2612_s7, %s2612_s7, %s2613_s11  }
  0x8b   : > { %s38_s3 = sadd.s32 1, %s2599_s25  ;;  %s52_s5 = sadd.s32 1, %s2591_s23 }
  0x8c   : > { %p39_p7 = scmp.ge.s32.totalorder %s38_s3, 2  ;;  %p59_p1 = scmp.ne.s32.totalorder %s2591_s23, %s2587_s22 }
  0x8d   : > { %p60_p3 = scmp.eq.s32.totalorder %s2603_s26, 0  ;;  %p65_p12 = scmp.ne.s32.totalorder %s2587_s22, %s2583_s21 }
  0x8e   : > { %s3113_s3 = smov (%p39_p7, %s38_s3), 0  ;;  %p2164_p13 = scmp.lt.s32.totalorder %s2603_s26, 2 }
  0x8f   : > { %p2871_p11 = por %p60_p3, %p59_p1  ;;  %s49_s14 = ssub.s32 %s2599_s25, %s3113_s3 }
  0x90   : > { %p50_p0 = scmp.eq.s32.totalorder %s49_s14, 0  ;;  %p3094_p2 = scmp.ne.s32.totalorder %s3088_s28, 0 }
  0x91   : > { %s435_s30 = sand.u32 1, %s2591_s23   ;;  %s1815_s15 = sshll.u32 %s2599_s25, 10 }
  0x92   : > { %p2882_p4 = por %p3094_p2, %p65_p12  ;;  %s1750_s12 = sshll.u32 %s435_s30, 6 }
  0x93   : > { %s2889_s17 = scalar_select %p50_p0, %s2591_s23, %s52_s5  }
  0x94   : > { %s2894_s7 = scalar_lea.hbm %s3063_s0, %s1815_s15  ;;  %s439_s21 = scalar_lea.vmem [#allocation4], %s1750_s12 }
  0x95   : > { %s448_s11 = sshll.u32 %s439_s21, 4  ;;  %p2898_p5 = pnand %p2164_p13, %p2871_p11  ;;  %s2902_s11 = int_to_ptr.vmem [resolvable:$true] %s448_s11 }
  0x96   : > { %s2904_s2 = scalar_lea.sflag [#allocation5], %s435_s30  ;;  %s2481_s5 = scalar_lea.hbm %s2894_s7, 1024 }
  0x97   : > { %p2482_p6 = scmp.ne.s32.totalorder %s2894_s7, %s2481_s5  ;;  %p2483_p8 = pneg %p2898_p5 }
  0x98   : > { %s2486_s15 = scalar_lea.hbm %s3063_s0, 2048  ;;  %p2487_p7 = scmp.lt.u32.totalorder %s2894_s7, %s3063_s0 }
  0x99   : > { %p2484_p9 = pnand %p2483_p8, %p2482_p6  ;;  %p2488_p1 = scmp.lt.u32.totalorder %s2486_s15, %s2481_s5 }
  0x9a   : > { %p2490_p11 = scmp.lt.u32.totalorder %s2481_s5, %s2894_s7 }
  0x9b   : > { %p2485_p10 = pneg %p2484_p9  ;;  %p2489_p3 = por %p2488_p1, %p2487_p7 }
  0x9d   : > { %p2491_p12 = por %p2490_p11, %p2489_p3 }
  0x9f   : > { %p2492_p13 = pnand %p2491_p12, %p2485_p10 }
  0xa1   : > { %2495 = shalt.err (!%p2492_p13)
}
  0xa2   : > { %s2496_s30 = scalar_lea.vmem %s2902_s11, 1024  ;;  %s2614_s16 = smov [#allocation4]  }
  0xa3   : > { %p2497_p0 = scmp.ne.s32.totalorder %s2902_s11, %s2496_s30  ;;  %s2501_s21 = sshll.u32 %s2614_s16, 4  ;;  %s2502_s21 = int_to_ptr.vmem [resolvable:$false] %s2501_s21 }
  0xa4   : > { %s2503_s14 = scalar_lea.vmem %s2502_s21, 2048  ;;  %p2504_p9 = scmp.lt.s32.totalorder %s2902_s11, %s2502_s21 }
  0xa5   : > { %p2499_p2 = pnand %p2497_p0, %p2483_p8  ;;  %p2505_p7 = scmp.lt.s32.totalorder %s2503_s14, %s2496_s30 }
  0xa7   : > { %p2500_p6 = pneg %p2499_p2  ;;  %p2506_p1 = por %p2505_p7, %p2504_p9 }
  0xa9   : > { %p2507_p3 = pnand %p2506_p1, %p2500_p6 }
  0xab   : > { %2510 = shalt.err (!%p2507_p3)
}
  0xac   : > { %2158 = dma.hbm_to_vmem [thread:$0]  (!%p2898_p5), %s2894_s7, 1024, %s2902_s11, %s2904_s2, %s2608_s27, %s2608_s27, %s2609_s19  }
  0xad   : > { %p3097_p8 = scmp.ne.s32.totalorder %s3089_s29, 0 }
  0xae   : > { %s472_s5 = sand.u32 (!%p3097_p8), 1, %s2587_s22  }
  0xaf   : > { %470 = sbr.rel (%p3097_p8) target bundleno = 1683 (0x693), region = 68  ;;  %s1754_s9 = sshll.u32 (!%p3097_p8), %s472_s5, 6 }
  0xb0   : > { %s473_s15 = scalar_lea.sflag (!%p3097_p8), [#allocation5], %s472_s5  ;;  %s2938_s12 = scalar_lea.vmem (!%p3097_p8), [#allocation4], %s1754_s9 }
  0xb6   : > { %2562 = dma.done.wait (%p2882_p4), %s473_s15, 1024  }
  0xb7   : > { %2564 = vsyncadd (%p2882_p4), %s473_s15, 4294966272  ;;  %p3098_p10 = scmp.ne.s32.totalorder %s3088_s28, 0 }
  0xb9   : > { %2566 = dma.done.wait (%p3098_p10), [#allocation8], 2048  }
  0xba   : > { %2568 = vsyncadd (%p3098_p10), [#allocation8], 4294965248 }
  0xbb   : > { %2570 = dma.done.wait (%p3098_p10), [#allocation11], 2048  }
  0xbc   : > { %2572 = vsyncadd (%p3098_p10), [#allocation11], 4294965248 }
  0xbd   : > { %2574 = dma.done.wait (%p3098_p10), [#allocation14], 2048  }
  0xbe   : > { %2576 = vsyncadd (%p3098_p10), [#allocation14], 4294965248  ;;  %p542_p4 = scmp.lt.s32.totalorder %s2595_s24, 1  ;;  %p1760_p5 = scmp.ne.s32.totalorder %s2595_s24, 0 }
  0xbf   : > { %v2615_v0 = vmov (!%p1760_p5), 0.0  }
  0xc0   : > { %s2958_s29 = scalar_select %p542_p4, %s2595_s24, 1 }
  0xc1   : > { %553 = sbr.rel (%p1760_p5) target bundleno = 200 (0xc8), region = 96  ;;  %554 = vst [vmem:[#allocation2] sm:$0xff] (!%p1760_p5), %v2615_v0  ;;  %555 = vst [vmem:[#allocation3] sm:$0xff] (!%p1760_p5), %v2615_v0 }
  0xc2   : > { %s544_s20 = scalar_lea.vmem %s3064_s1, %s2958_s29 }
  0xc8 PF: > { %v2237_v1 = vld [vmem:[#allocation7] sm:$0xff]   ;;  %v2238_v2 = vld [vmem:[#allocation7 + $0x8] sm:$0xff]   ;;  %v2239_v3 = vld [vmem:[#allocation7 + $0x10] sm:$0xff]   ;;  %s3099_s11 = sld [smem:[#allocation22_spill]]  ;;  %s3100_s13 = sld [smem:[#allocation23_spill]]  ;;  %vm2617_vm0 = vmmov 0  }
  0xc9   : > { %1906 = vmatprep.subr.bf16.mxu0 %v2237_v1  ;;  %v2240_v4 = vld [vmem:[#allocation7 + $0x18] sm:$0xff]   ;;  %v2245_v5 = vld [vmem:[%s2938_s12] sm:$0xff]   ;;  %v2242_v7 = vld [vmem:[#allocation7 + $0x28] sm:$0xff]   ;;  %s3101_s21 = sld [smem:[#allocation24_spill]]  ;;  %p1809_p11 = scmp.ne.s32.totalorder %s2595_s24, 1 }
  0xca   : > { %1907 = vmatpush3.bf16.msra.mxu0 %v2237_v1  ;;  %1922 = vmatprep.mubr.bf16.mxu0 %v2245_v5  ;;  %v2241_v6 = vld [vmem:[#allocation7 + $0x20] sm:$0xff]   ;;  %v2254_v9 = vld [vmem:[#allocation9 + $0x8] sm:$0xff]   ;;  %v2243_v10 = vld [vmem:[#allocation7 + $0x30] sm:$0xff]   ;;  %vm2620_vm3 = vmmov (!%p1809_p11), 0   ;;  %s3103_s27 = sld [smem:[#allocation26_spill]] (!%p1809_p11) }
  0xcb   : > { %1908 = vmatprep.subr.bf16.mxu0 %v2238_v2  ;;  %v2253_v8 = vld [vmem:[#allocation9] sm:$0xff]   ;;  %v2244_v11 = vld [vmem:[#allocation7 + $0x38] sm:$0xff]   ;;  %v2246_v12 = vld [vmem:[%s2938_s12 + $0x8] sm:$0xff]  }
  0xcc   : > { %1938 = vmatprep.subr.bf16.mxu1 %v2253_v8  ;;  %v2247_v13 = vld [vmem:[%s2938_s12 + $0x10] sm:$0xff]   ;;  %v2248_v14 = vld [vmem:[%s2938_s12 + $0x18] sm:$0xff]   ;;  %v2249_v15 = vld [vmem:[%s2938_s12 + $0x20] sm:$0xff]  }
  0xcd   : > { %1939 = vmatpush3.bf16.msra.mxu1 %v2253_v8  ;;  %v2250_v16 = vld [vmem:[%s2938_s12 + $0x28] sm:$0xff]   ;;  %v2251_v17 = vld [vmem:[%s2938_s12 + $0x30] sm:$0xff]   ;;  %v2252_v18 = vld [vmem:[%s2938_s12 + $0x38] sm:$0xff]   ;;  %s3102_s12 = sld [smem:[#allocation25_spill]] }
  0xce   : > { %1909 = vmatpush3.bf16.msra.mxu0 %v2238_v2  ;;  %1940 = vmatprep.subr.bf16.mxu1 %v2254_v9  ;;  %v2255_v19 = vld [vmem:[#allocation9 + $0x10] sm:$0xff]   ;;  %v2256_v20 = vld [vmem:[#allocation9 + $0x18] sm:$0xff]   ;;  %v2257_v21 = vld [vmem:[#allocation9 + $0x20] sm:$0xff]  }
  0xcf   : > { %1910 = vmatprep.subr.bf16.mxu0 %v2239_v3  ;;  %v2258_v22 = vld [vmem:[#allocation9 + $0x28] sm:$0xff]   ;;  %v2259_v23 = vld [vmem:[#allocation9 + $0x30] sm:$0xff]   ;;  %v2260_v24 = vld [vmem:[#allocation9 + $0x38] sm:$0xff]  }
  0xd0   : > { %v2261_v25 = vld [vmem:[#allocation10] sm:$0xff]   ;;  %v2262_v26 = vld [vmem:[#allocation10 + $0x8] sm:$0xff]   ;;  %v1761_v28 = vld [vmem:[%s3099_s11] ss:$0 sm:$0xff] }
  0xd1   : > { %1941 = vmatpush3.bf16.msra.mxu1 %v2254_v9 }
  0xd2   : > { %1911 = vmatpush3.bf16.msra.mxu0 %v2239_v3  ;;  %1942 = vmatprep.subr.bf16.mxu1 %v2255_v19 }
  0xd3   : > { %1912 = vmatprep.subr.bf16.mxu0 %v2240_v4 }
  0xd5   : > { %1943 = vmatpush3.bf16.msra.mxu1 %v2255_v19 }
  0xd6   : > { %1913 = vmatpush3.bf16.msra.mxu0 %v2240_v4  ;;  %1944 = vmatprep.subr.bf16.mxu1 %v2256_v20 }
  0xd7   : > { %1914 = vmatprep.subr.bf16.mxu0 %v2241_v6 }
  0xd9   : > { %1945 = vmatpush3.bf16.msra.mxu1 %v2256_v20 }
  0xda   : > { %1915 = vmatpush3.bf16.msra.mxu0 %v2241_v6  ;;  %1946 = vmatprep.subr.bf16.mxu1 %v2257_v21 }
  0xdb   : > { %1916 = vmatprep.subr.bf16.mxu0 %v2242_v7 }
  0xdd   : > { %1947 = vmatpush3.bf16.msra.mxu1 %v2257_v21 }
  0xde   : > { %1917 = vmatpush3.bf16.msra.mxu0 %v2242_v7  ;;  %1948 = vmatprep.subr.bf16.mxu1 %v2258_v22 }
  0xdf   : > { %1918 = vmatprep.subr.bf16.mxu0 %v2243_v10 }
  0xe1   : > { %1949 = vmatpush3.bf16.msra.mxu1 %v2258_v22 }
  0xe2   : > { %1919 = vmatpush3.bf16.msra.mxu0 %v2243_v10  ;;  %1950 = vmatprep.subr.bf16.mxu1 %v2259_v23 }
  0xe3   : > { %1920 = vmatprep.subr.bf16.mxu0 %v2244_v11 }
  0xe5   : > { %1951 = vmatpush3.bf16.msra.mxu1 %v2259_v23 }
  0xe6   : > { %1921 = vmatpush3.bf16.msra.mxu0 %v2244_v11  ;;  %1952 = vmatprep.subr.bf16.mxu1 %v2260_v24 }
  0xe7   : > { %1970 = vmatprep.subr.bf16.mxu0 %v2261_v25 }
  0xe9   : > { %1923 = vmatmul.mubr.bf16.vlgmr.msra.gmra.mrb[0].mxu0 %v2246_v12  ;;  %1953 = vmatpush3.bf16.msra.mxu1 %v2260_v24 }
  0xea   : > { %1926 = vmatprep.mubr.bf16.mxu0 %v2247_v13  ;;  %1971 = vmatpush3.bf16.msra.mxu0 %v2261_v25 }
  0xeb   : > { %1972 = vmatprep.subr.bf16.mxu0 %v2262_v26 }
  0xee   : > { %1973 = vmatpush3.bf16.msra.mxu0 %v2262_v26 }
  0xf1   : > { %1927 = vmatmul.mubr.bf16.gmra.mrb[4].mxu0 %v2248_v14 }
  0xf2   : > { %1930 = vmatprep.mubr.bf16.mxu0 %v2249_v15 }
  0xf9   : > { %1931 = vmatmul.mubr.bf16.gmra.mrb[8].mxu0 %v2250_v16 }
  0xfa   : > { %1934 = vmatprep.mubr.bf16.mxu0 %v2251_v17 }
 0x101   : > { %1935 = vmatmul.mubr.bf16.gmra.mrb[12].mxu0 %v2252_v18 }
 0x1bc   : > { %v1924_v27 = vpop.f32.mrb[0].mxu0 }
 0x1bd   : > { %v725_v29 = vpop.f32.mrb[1].mxu0  ;;  %v734_v31 = vadd.f32 %v1924_v27, %v1761_v28 }
 0x1be   : > { %v1925_v30 = vpop.f32.mrb[2].mxu0  ;;  %v726_v34 = vadd.f32 %v1761_v28, %v725_v29 }
 0x1bf   : > { %v737_v32 = vadd.f32 %v1925_v30, %v1761_v28  ;;  %v728_v33 = vpop.f32.mrb[3].mxu0 }
 0x1c0   : > { %v729_v35 = vadd.f32 %v1761_v28, %v728_v33 }
 0x1c1   : > { %v789_v36 = vpack.c.bf16 %v737_v32, %v734_v31 }
 0x1c2   : > { %v788_v37 = vpack.c.bf16 %v729_v35, %v726_v34 }
 0x1c3   : > { %v797_v38 = vmul.bf16 1056980736, %v789_v36  ;;  %v2263_v36 = vld [vmem:[#allocation10 + $0x10] sm:$0xff]  }
 0x1c4   : > { %v1928_v39 = vpop.f32.mrb[4].mxu0  ;;  %v796_v40 = vmul.bf16 1056980736, %v788_v37  ;;  %1974 = vmatprep.subr.bf16.mxu0 %v2263_v36  ;;  %v2264_v37 = vld [vmem:[#allocation10 + $0x18] sm:$0xff]  }
 0x1c5   : > { %2277 = vtanh.bf16 %v797_v38  ;;  %v741_v41 = vpop.f32.mrb[5].mxu0  ;;  %v750_v43 = vadd.f32 %v1928_v39, %v1761_v28  ;;  %1975 = vmatpush3.bf16.msra.mxu0 %v2263_v36  ;;  %v2266_v39 = vld [vmem:[#allocation10 + $0x28] sm:$0xff]  }
 0x1c6   : > { %v1929_v42 = vpop.f32.mrb[6].mxu0  ;;  %2279 = vtanh.bf16 %v796_v40  ;;  %v742_v46 = vadd.f32 %v1761_v28, %v741_v41  ;;  %1976 = vmatprep.subr.bf16.mxu0 %v2264_v37  ;;  %v2268_v41 = vld [vmem:[#allocation10 + $0x38] sm:$0xff]  }
 0x1c7   : > { %v753_v44 = vadd.f32 %v1929_v42, %v1761_v28  ;;  %v744_v45 = vpop.f32.mrb[7].mxu0  ;;  %v2269_v42 = vld [vmem:[#allocation12] sm:$0xff]  }
 0x1c8   : > { %v745_v47 = vadd.f32 %v1761_v28, %v744_v45  ;;  %2002 = vmatprep.subr.bf16.mxu1 %v2269_v42  ;;  %v1778_v45 = vld [vmem:[%s3100_s13] ss:$0 sm:$0xff] }
 0x1c9   : > { %v791_v48 = vpack.c.bf16 %v753_v44, %v750_v43  ;;  %1977 = vmatpush3.bf16.msra.mxu0 %v2264_v37  ;;  %v2270_v43 = vld [vmem:[#allocation12 + $0x8] sm:$0xff]  }
 0x1ca   : > { %v790_v49 = vpack.c.bf16 %v745_v47, %v742_v46 }
 0x1cb   : > { %v799_v50 = vmul.bf16 1056980736, %v791_v48 }
 0x1cc   : > { %v798_v51 = vmul.bf16 1056980736, %v790_v49  ;;  %v1932_v52 = vpop.f32.mrb[8].mxu0 }
 0x1cd   : > { %2281 = vtanh.bf16 %v799_v50  ;;  %v757_v53 = vpop.f32.mrb[9].mxu0  ;;  %v766_v55 = vadd.f32 %v1932_v52, %v1761_v28 }
 0x1ce   : > { %2283 = vtanh.bf16 %v798_v51  ;;  %v1933_v54 = vpop.f32.mrb[10].mxu0  ;;  %v758_v59 = vadd.f32 %v1761_v28, %v757_v53 }
 0x1cf   : > { %v769_v56 = vadd.f32 %v1933_v54, %v1761_v28  ;;  %v760_v57 = vpop.f32.mrb[11].mxu0 }
 0x1d0   : > { %v2278_v58 = vpop.eup %2277  ;;  %v761_v60 = vadd.f32 %v1761_v28, %v760_v57 }
 0x1d1   : > { %v2280_v61 = vpop.eup %2279  ;;  %v793_v62 = vpack.c.bf16 %v769_v56, %v766_v55  ;;  %v813_v63 = vadd.bf16 1065369472, %v2278_v58 }
 0x1d2   : > { %v792_v0 = vpack.c.bf16 %v761_v60, %v758_v59  ;;  %v812_v1 = vadd.bf16 1065369472, %v2280_v61 }
 0x1d3   : > { %v801_v2 = vmul.bf16 1056980736, %v793_v62  ;;  %v821_v7 = vmul.bf16 %v813_v63, %v797_v38  ;;  %v2265_v38 = vld [vmem:[#allocation10 + $0x20] sm:$0xff]  }
 0x1d4   : > { %v800_v3 = vmul.bf16 1056980736, %v792_v0  ;;  %v1936_v4 = vpop.f32.mrb[12].mxu0  ;;  %v820_v5 = vmul.bf16 %v812_v1, %v796_v40  ;;  %1978 = vmatprep.subr.bf16.mxu0 %v2265_v38  ;;  %v2267_v40 = vld [vmem:[#allocation10 + $0x30] sm:$0xff]  }
 0x1d5   : > { %2285 = vtanh.bf16 %v801_v2  ;;  %v773_v6 = vpop.f32.mrb[13].mxu0  ;;  %v782_v9 = vadd.f32 %v1936_v4, %v1761_v28  ;;  %1979 = vmatpush3.bf16.msra.mxu0 %v2265_v38 }
 0x1d6   : > { %2287 = vtanh.bf16 %v800_v3  ;;  %v1937_v8 = vpop.f32.mrb[14].mxu0  ;;  %1954 = vmatprep.mubr.bf16.mxu1 %v820_v5  ;;  %v774_v13 = vadd.f32 %v1761_v28, %v773_v6  ;;  %1980 = vmatprep.subr.bf16.mxu0 %v2266_v39 }
 0x1d7   : > { %v785_v10 = vadd.f32 %v1937_v8, %v1761_v28  ;;  %v776_v11 = vpop.f32.mrb[15].mxu0  ;;  %1955 = vmatmul.mubr.bf16.vlgmr.msra.gmra.mrb[0].mxu1 %v821_v7 }
 0x1d8   : > { %v2282_v12 = vpop.eup %2281  ;;  %v777_v14 = vadd.f32 %v1761_v28, %v776_v11  ;;  %2003 = vmatpush3.bf16.msra.mxu1 %v2269_v42 }
 0x1d9   : > { %v2284_v15 = vpop.eup %2283  ;;  %v795_v16 = vpack.c.bf16 %v785_v10, %v782_v9  ;;  %v815_v17 = vadd.bf16 1065369472, %v2282_v12  ;;  %1981 = vmatpush3.bf16.msra.mxu0 %v2266_v39  ;;  %2004 = vmatprep.subr.bf16.mxu1 %v2270_v43 }
 0x1da   : > { %v794_v18 = vpack.c.bf16 %v777_v14, %v774_v13  ;;  %v814_v19 = vadd.bf16 1065369472, %v2284_v15  ;;  %1982 = vmatprep.subr.bf16.mxu0 %v2267_v40 }
 0x1db   : > { %v803_v20 = vmul.bf16 1056980736, %v795_v16  ;;  %v823_v23 = vmul.bf16 %v815_v17, %v799_v50 }
 0x1dc   : > { %v802_v21 = vmul.bf16 1056980736, %v794_v18  ;;  %v822_v22 = vmul.bf16 %v814_v19, %v798_v51  ;;  %2005 = vmatpush3.bf16.msra.mxu1 %v2270_v43 }
 0x1dd   : > { %2289 = vtanh.bf16 %v803_v20  ;;  %1983 = vmatpush3.bf16.msra.mxu0 %v2267_v40 }
 0x1de   : > { %2291 = vtanh.bf16 %v802_v21  ;;  %1958 = vmatprep.mubr.bf16.mxu1 %v822_v22  ;;  %1984 = vmatprep.subr.bf16.mxu0 %v2268_v41 }
 0x1df   : > { %1959 = vmatmul.mubr.bf16.gmra.mrb[4].mxu1 %v823_v23 }
 0x1e0   : > { %v2286_v24 = vpop.eup %2285 }
 0x1e1   : > { %v2288_v25 = vpop.eup %2287  ;;  %v817_v26 = vadd.bf16 1065369472, %v2286_v24  ;;  %1985 = vmatpush3.bf16.msra.mxu0 %v2268_v41 }
 0x1e2   : > { %v816_v27 = vadd.bf16 1065369472, %v2288_v25 }
 0x1e3   : > { %v825_v30 = vmul.bf16 %v817_v26, %v801_v2 }
 0x1e4   : > { %v824_v29 = vmul.bf16 %v816_v27, %v800_v3 }
 0x1e6   : > { %1962 = vmatprep.mubr.bf16.mxu1 %v824_v29 }
 0x1e7   : > { %1963 = vmatmul.mubr.bf16.gmra.mrb[8].mxu1 %v825_v30 }
 0x1e8   : > { %v2290_v28 = vpop.eup %2289 }
 0x1e9   : > { %v2292_v31 = vpop.eup %2291  ;;  %v819_v32 = vadd.bf16 1065369472, %v2290_v28 }
 0x1ea   : > { %v818_v33 = vadd.bf16 1065369472, %v2292_v31 }
 0x1eb   : > { %v827_v35 = vmul.bf16 %v819_v32, %v803_v20 }
 0x1ec   : > { %v826_v34 = vmul.bf16 %v818_v33, %v802_v21 }
 0x1ee   : > { %1966 = vmatprep.mubr.bf16.mxu1 %v826_v34 }
 0x1ef   : > { %1967 = vmatmul.mubr.bf16.gmra.mrb[12].mxu1 %v827_v35 }
 0x2aa   : > { %v1956_v44 = vpop.f32.mrb[0].mxu1 }
 0x2ab   : > { %v933_v46 = vpop.f32.mrb[1].mxu1  ;;  %v942_v48 = vadd.f32 %v1956_v44, %v1778_v45 }
 0x2ac   : > { %v1957_v47 = vpop.f32.mrb[2].mxu1  ;;  %v934_v51 = vadd.f32 %v1778_v45, %v933_v46 }
 0x2ad   : > { %v945_v49 = vadd.f32 %v1957_v47, %v1778_v45  ;;  %v936_v50 = vpop.f32.mrb[3].mxu1 }
 0x2ae   : > { %v937_v52 = vadd.f32 %v1778_v45, %v936_v50 }
 0x2af   : > { %v997_v53 = vpack.c.bf16 %v945_v49, %v942_v48 }
 0x2b0   : > { %v996_v54 = vpack.c.bf16 %v937_v52, %v934_v51 }
 0x2b1   : > { %v1005_v55 = vmul.bf16 1056980736, %v997_v53  ;;  %v2271_v53 = vld [vmem:[#allocation12 + $0x10] sm:$0xff]  }
 0x2b2   : > { %v1004_v56 = vmul.bf16 1056980736, %v996_v54  ;;  %v1960_v57 = vpop.f32.mrb[4].mxu1  ;;  %2006 = vmatprep.subr.bf16.mxu1 %v2271_v53  ;;  %v2272_v54 = vld [vmem:[#allocation12 + $0x18] sm:$0xff]  }
 0x2b3   : > { %2293 = vtanh.bf16 %v1005_v55  ;;  %v949_v58 = vpop.f32.mrb[5].mxu1  ;;  %v958_v60 = vadd.f32 %v1960_v57, %v1778_v45  ;;  %2007 = vmatpush3.bf16.msra.mxu1 %v2271_v53  ;;  %v2275_v57 = vld [vmem:[#allocation12 + $0x30] sm:$0xff]  }
 0x2b4   : > { %2295 = vtanh.bf16 %v1004_v56  ;;  %v1961_v59 = vpop.f32.mrb[6].mxu1  ;;  %v950_v63 = vadd.f32 %v1778_v45, %v949_v58  ;;  %2008 = vmatprep.subr.bf16.mxu1 %v2272_v54  ;;  %v2276_v58 = vld [vmem:[#allocation12 + $0x38] sm:$0xff]  }
 0x2b5   : > { %v961_v61 = vadd.f32 %v1961_v59, %v1778_v45  ;;  %v952_v62 = vpop.f32.mrb[7].mxu1 }
 0x2b6   : > { %v953_v0 = vadd.f32 %v1778_v45, %v952_v62 }
 0x2b7   : > { %v999_v1 = vpack.c.bf16 %v961_v61, %v958_v60  ;;  %2009 = vmatpush3.bf16.msra.mxu1 %v2272_v54  ;;  %v1787_v60 = vld [vmem:[%s3101_s21] ss:$0 sm:$0xff] }
 0x2b8   : > { %v998_v2 = vpack.c.bf16 %v953_v0, %v950_v63 }
 0x2b9   : > { %v1007_v3 = vmul.bf16 1056980736, %v999_v1 }
 0x2ba   : > { %v1006_v4 = vmul.bf16 1056980736, %v998_v2  ;;  %v1964_v5 = vpop.f32.mrb[8].mxu1 }
 0x2bb   : > { %2297 = vtanh.bf16 %v1007_v3  ;;  %v965_v6 = vpop.f32.mrb[9].mxu1  ;;  %v974_v8 = vadd.f32 %v1964_v5, %v1778_v45 }
 0x2bc   : > { %2299 = vtanh.bf16 %v1006_v4  ;;  %v1965_v7 = vpop.f32.mrb[10].mxu1  ;;  %v966_v12 = vadd.f32 %v1778_v45, %v965_v6 }
 0x2bd   : > { %v977_v9 = vadd.f32 %v1965_v7, %v1778_v45  ;;  %v968_v10 = vpop.f32.mrb[11].mxu1 }
 0x2be   : > { %v2294_v11 = vpop.eup %2293  ;;  %v969_v13 = vadd.f32 %v1778_v45, %v968_v10 }
 0x2bf   : > { %v2296_v14 = vpop.eup %2295  ;;  %v1021_v15 = vadd.bf16 1065369472, %v2294_v11  ;;  %v1001_v16 = vpack.c.bf16 %v977_v9, %v974_v8 }
 0x2c0   : > { %v1000_v17 = vpack.c.bf16 %v969_v13, %v966_v12  ;;  %v1020_v18 = vadd.bf16 1065369472, %v2296_v14 }
 0x2c1   : > { %v1009_v19 = vmul.bf16 1056980736, %v1001_v16  ;;  %v1029_v23 = vmul.bf16 %v1021_v15, %v1005_v55  ;;  %v2273_v55 = vld [vmem:[#allocation12 + $0x20] sm:$0xff]  }
 0x2c2   : > { %v1008_v20 = vmul.bf16 1056980736, %v1000_v17  ;;  %v1968_v21 = vpop.f32.mrb[12].mxu1  ;;  %v1028_v22 = vmul.bf16 %v1020_v18, %v1004_v56  ;;  %2010 = vmatprep.subr.bf16.mxu1 %v2273_v55  ;;  %v2274_v56 = vld [vmem:[#allocation12 + $0x28] sm:$0xff]  }
 0x2c3   : > { %2301 = vtanh.bf16 %v1009_v19  ;;  %v981_v24 = vpop.f32.mrb[13].mxu1  ;;  %v990_v26 = vadd.f32 %v1968_v21, %v1778_v45  ;;  %2011 = vmatpush3.bf16.msra.mxu1 %v2273_v55 }
 0x2c4   : > { %2303 = vtanh.bf16 %v1008_v20  ;;  %v1969_v25 = vpop.f32.mrb[14].mxu1  ;;  %1986 = vmatprep.mubr.bf16.mxu0 %v1028_v22  ;;  %v982_v28 = vadd.f32 %v1778_v45, %v981_v24  ;;  %2012 = vmatprep.subr.bf16.mxu1 %v2274_v56 }
 0x2c5   : > { %v993_v27 = vadd.f32 %v1969_v25, %v1778_v45  ;;  %v984_v29 = vpop.f32.mrb[15].mxu1  ;;  %1987 = vmatmul.mubr.bf16.vlgmr.msra.gmra.mrb[16].mxu0 %v1029_v23 }
 0x2c6   : > { %v2298_v30 = vpop.eup %2297  ;;  %v985_v31 = vadd.f32 %v1778_v45, %v984_v29 }
 0x2c7   : > { %v2300_v32 = vpop.eup %2299  ;;  %v1003_v33 = vpack.c.bf16 %v993_v27, %v990_v26  ;;  %v1023_v34 = vadd.bf16 1065369472, %v2298_v30  ;;  %2013 = vmatpush3.bf16.msra.mxu1 %v2274_v56 }
 0x2c8   : > { %v1002_v35 = vpack.c.bf16 %v985_v31, %v982_v28  ;;  %v1022_v36 = vadd.bf16 1065369472, %v2300_v32  ;;  %2014 = vmatprep.subr.bf16.mxu1 %v2275_v57 }
 0x2c9   : > { %v1011_v37 = vmul.bf16 1056980736, %v1003_v33  ;;  %v1031_v40 = vmul.bf16 %v1023_v34, %v1007_v3 }
 0x2ca   : > { %v1010_v38 = vmul.bf16 1056980736, %v1002_v35  ;;  %v1030_v39 = vmul.bf16 %v1022_v36, %v1006_v4 }
 0x2cb   : > { %2305 = vtanh.bf16 %v1011_v37  ;;  %2015 = vmatpush3.bf16.msra.mxu1 %v2275_v57 }
 0x2cc   : > { %2307 = vtanh.bf16 %v1010_v38  ;;  %1990 = vmatprep.mubr.bf16.mxu0 %v1030_v39  ;;  %2016 = vmatprep.subr.bf16.mxu1 %v2276_v58 }
 0x2cd   : > { %1991 = vmatmul.mubr.bf16.gmra.mrb[20].mxu0 %v1031_v40 }
 0x2ce   : > { %v2302_v41 = vpop.eup %2301 }
 0x2cf   : > { %v2304_v42 = vpop.eup %2303  ;;  %v1025_v43 = vadd.bf16 1065369472, %v2302_v41  ;;  %2017 = vmatpush3.bf16.msra.mxu1 %v2276_v58 }
 0x2d0   : > { %v1024_v44 = vadd.bf16 1065369472, %v2304_v42 }
 0x2d1   : > { %v1033_v47 = vmul.bf16 %v1025_v43, %v1009_v19 }
 0x2d2   : > { %v1032_v46 = vmul.bf16 %v1024_v44, %v1008_v20 }
 0x2d4   : > { %1994 = vmatprep.mubr.bf16.mxu0 %v1032_v46 }
 0x2d5   : > { %1995 = vmatmul.mubr.bf16.gmra.mrb[24].mxu0 %v1033_v47 }
 0x2d6   : > { %v2306_v45 = vpop.eup %2305 }
 0x2d7   : > { %v2308_v48 = vpop.eup %2307  ;;  %v1027_v49 = vadd.bf16 1065369472, %v2306_v45 }
 0x2d8   : > { %v1026_v50 = vadd.bf16 1065369472, %v2308_v48 }
 0x2d9   : > { %v1035_v52 = vmul.bf16 %v1027_v49, %v1011_v37 }
 0x2da   : > { %v1034_v51 = vmul.bf16 %v1026_v50, %v1010_v38 }
 0x2dc   : > { %1998 = vmatprep.mubr.bf16.mxu0 %v1034_v51 }
 0x2dd   : > { %1999 = vmatmul.mubr.bf16.gmra.mrb[28].mxu0 %v1035_v52 }
 0x398   : > { %v1988_v59 = vpop.f32.mrb[16].mxu0 }
 0x399   : > { %v1141_v61 = vpop.f32.mrb[17].mxu0  ;;  %v1150_v63 = vadd.f32 %v1988_v59, %v1787_v60 }
 0x39a   : > { %v1989_v62 = vpop.f32.mrb[18].mxu0  ;;  %v1142_v2 = vadd.f32 %v1787_v60, %v1141_v61 }
 0x39b   : > { %v1153_v0 = vadd.f32 %v1989_v62, %v1787_v60  ;;  %v1144_v1 = vpop.f32.mrb[19].mxu0 }
 0x39c   : > { %v1145_v3 = vadd.f32 %v1787_v60, %v1144_v1 }
 0x39d   : > { %v1205_v4 = vpack.c.bf16 %v1153_v0, %v1150_v63 }
 0x39e   : > { %v1204_v5 = vpack.c.bf16 %v1145_v3, %v1142_v2 }
 0x39f   : > { %v1213_v6 = vmul.bf16 1056980736, %v1205_v4  ;;  %v2616_v4 = vmov 0.0  }
 0x3a0   : > { %v1212_v7 = vmul.bf16 1056980736, %v1204_v5  ;;  %v1992_v8 = vpop.f32.mrb[20].mxu0  ;;  %2034 = vmatprep.subr.bf16.mxu0 %v2616_v4  ;;  %v1452_v5 = vlaneseq  ;;  %2050 = vmatprep.mubr.msk.bf16.mxu0 %vm2617_vm0, %v2616_v4 }
 0x3a1   : > { %2309 = vtanh.bf16 %v1213_v6  ;;  %v1157_v9 = vpop.f32.mrb[21].mxu0  ;;  %v1166_v11 = vadd.f32 %v1992_v8, %v1787_v60 }
 0x3a2   : > { %2311 = vtanh.bf16 %v1212_v7  ;;  %v1993_v10 = vpop.f32.mrb[22].mxu0  ;;  %v1158_v14 = vadd.f32 %v1787_v60, %v1157_v9 }
 0x3a3   : > { %v1169_v12 = vadd.f32 %v1993_v10, %v1787_v60  ;;  %v1160_v13 = vpop.f32.mrb[23].mxu0  ;;  %v1796_v10 = vld [vmem:[%s3102_s12] ss:$0 sm:$0xff] }
 0x3a4   : > { %v1161_v15 = vadd.f32 %v1787_v60, %v1160_v13 }
 0x3a5   : > { %v1207_v16 = vpack.c.bf16 %v1169_v12, %v1166_v11 }
 0x3a6   : > { %v1206_v17 = vpack.c.bf16 %v1161_v15, %v1158_v14 }
 0x3a7   : > { %v1215_v18 = vmul.bf16 1056980736, %v1207_v16 }
 0x3a8   : > { %v1214_v19 = vmul.bf16 1056980736, %v1206_v17  ;;  %v1996_v20 = vpop.f32.mrb[24].mxu0 }
 0x3a9   : > { %2313 = vtanh.bf16 %v1215_v18  ;;  %v1173_v21 = vpop.f32.mrb[25].mxu0  ;;  %v1182_v23 = vadd.f32 %v1996_v20, %v1787_v60 }
 0x3aa   : > { %2315 = vtanh.bf16 %v1214_v19  ;;  %v1997_v22 = vpop.f32.mrb[26].mxu0  ;;  %v1174_v27 = vadd.f32 %v1787_v60, %v1173_v21 }
 0x3ab   : > { %v1185_v24 = vadd.f32 %v1997_v22, %v1787_v60  ;;  %v1176_v25 = vpop.f32.mrb[27].mxu0 }
 0x3ac   : > { %v2310_v26 = vpop.eup %2309  ;;  %v1177_v29 = vadd.f32 %v1787_v60, %v1176_v25 }
 0x3ad   : > { %v2312_v30 = vpop.eup %2311  ;;  %v1229_v28 = vadd.bf16 1065369472, %v2310_v26  ;;  %v1209_v31 = vpack.c.bf16 %v1185_v24, %v1182_v23 }
 0x3ae   : > { %v1208_v32 = vpack.c.bf16 %v1177_v29, %v1174_v27  ;;  %v1228_v33 = vadd.bf16 1065369472, %v2312_v30 }
 0x3af   : > { %v1217_v34 = vmul.bf16 1056980736, %v1209_v31  ;;  %v1237_v38 = vmul.bf16 %v1229_v28, %v1213_v6  ;;  %v2983_v6 = vshrl.u32 %v1452_v5, 7 }
 0x3b0   : > { %v1216_v35 = vmul.bf16 1056980736, %v1208_v32  ;;  %v2000_v36 = vpop.f32.mrb[28].mxu0  ;;  %v1236_v37 = vmul.bf16 %v1228_v33, %v1212_v7  ;;  %v2990_v7 = vld [vmem:[%s544_s20] ss:$0 sm:$0xff] }
 0x3b1   : > { %2317 = vtanh.bf16 %v1217_v34  ;;  %v1189_v39 = vpop.f32.mrb[29].mxu0  ;;  %v1198_v41 = vadd.f32 %v2000_v36, %v1787_v60  ;;  %vm1459_vm1 = vcmp.eq.s32.totalorder %v2983_v6, %v2990_v7  ;;  %v1518_v6 = vld [vmem:[#allocation13 + $0x8] sm:$0xff] (!%p1809_p11)  ;;  %v1519_v7 = vld [vmem:[#allocation13 + $0x10] sm:$0xff] (!%p1809_p11) }
 0x3b2   : > { %2319 = vtanh.bf16 %v1216_v35  ;;  %v2001_v40 = vpop.f32.mrb[30].mxu0  ;;  %2018 = vmatprep.mubr.bf16.mxu1 %v1236_v37  ;;  %v1190_v46 = vadd.f32 %v1787_v60, %v1189_v39  ;;  %v1806_v8 = vsel %vm1459_vm1, 1.0, %v2616_v4  ;;  %vm1807_vm2 = vmpackc.low %vm1459_vm1, %vm1459_vm1 }
 0x3b3   : > { %v1201_v42 = vadd.f32 %v2001_v40, %v1787_v60  ;;  %v1192_v43 = vpop.f32.mrb[31].mxu0  ;;  %2019 = vmatmul.mubr.bf16.vlgmr.msra.gmra.mrb[16].mxu1 %v1237_v38  ;;  %1508 = vadd.xlane.f32.xlu0 %v1806_v8 }
 0x3b4   : > { %v2314_v44 = vpop.eup %2313  ;;  %v1193_v47 = vadd.f32 %v1787_v60, %v1192_v43 }
 0x3b5   : > { %v2316_v45 = vpop.eup %2315  ;;  %v1211_v48 = vpack.c.bf16 %v1201_v42, %v1198_v41  ;;  %v1231_v49 = vadd.bf16 1065369472, %v2314_v44 }
 0x3b6   : > { %v1210_v50 = vpack.c.bf16 %v1193_v47, %v1190_v46  ;;  %v1230_v51 = vadd.bf16 1065369472, %v2316_v45 }
 0x3b7   : > { %v1219_v52 = vmul.bf16 1056980736, %v1211_v48  ;;  %v1239_v55 = vmul.bf16 %v1231_v49, %v1215_v18 }
 0x3b8   : > { %v1218_v53 = vmul.bf16 1056980736, %v1210_v50  ;;  %v1238_v54 = vmul.bf16 %v1230_v51, %v1214_v19 }
 0x3b9   : > { %2321 = vtanh.bf16 %v1219_v52 }
 0x3ba   : > { %2323 = vtanh.bf16 %v1218_v53  ;;  %2022 = vmatprep.mubr.bf16.mxu1 %v1238_v54 }
 0x3bb   : > { %2023 = vmatmul.mubr.bf16.gmra.mrb[20].mxu1 %v1239_v55 }
 0x3bc   : > { %v2318_v56 = vpop.eup %2317 }
 0x3bd   : > { %v2320_v57 = vpop.eup %2319  ;;  %v1233_v58 = vadd.bf16 1065369472, %v2318_v56 }
 0x3be   : > { %v1232_v59 = vadd.bf16 1065369472, %v2320_v57 }
 0x3bf   : > { %v1241_v60 = vmul.bf16 %v1233_v58, %v1217_v34 }
 0x3c0   : > { %v1240_v61 = vmul.bf16 %v1232_v59, %v1216_v35 }
 0x3c2   : > { %2026 = vmatprep.mubr.bf16.mxu1 %v1240_v61 }
 0x3c3   : > { %2027 = vmatmul.mubr.bf16.gmra.mrb[24].mxu1 %v1241_v60 }
 0x3c4   : > { %v2322_v62 = vpop.eup %2321 }
 0x3c5   : > { %v2324_v63 = vpop.eup %2323  ;;  %v1235_v0 = vadd.bf16 1065369472, %v2322_v62 }
 0x3c6   : > { %v1234_v1 = vadd.bf16 1065369472, %v2324_v63 }
 0x3c7   : > { %v1243_v3 = vmul.bf16 %v1235_v0, %v1219_v52 }
 0x3c8   : > { %v1242_v2 = vmul.bf16 %v1234_v1, %v1218_v53 }
 0x3ca   : > { %2030 = vmatprep.mubr.bf16.mxu1 %v1242_v2 }
 0x3cb   : > { %2031 = vmatmul.mubr.bf16.gmra.mrb[28].mxu1 %v1243_v3 }
 0x486   : > { %v2020_v9 = vpop.f32.mrb[16].mxu1 }
 0x487   : > { %v1349_v11 = vpop.f32.mrb[17].mxu1  ;;  %v1358_v13 = vadd.f32 %v2020_v9, %v1796_v10 }
 0x488   : > { %v2021_v12 = vpop.f32.mrb[18].mxu1  ;;  %v1350_v16 = vadd.f32 %v1796_v10, %v1349_v11 }
 0x489   : > { %v1361_v14 = vadd.f32 %v2021_v12, %v1796_v10  ;;  %v1352_v15 = vpop.f32.mrb[19].mxu1 }
 0x48a   : > { %v1353_v17 = vadd.f32 %v1796_v10, %v1352_v15 }
 0x48b   : > { %v1413_v18 = vpack.c.bf16 %v1361_v14, %v1358_v13 }
 0x48c   : > { %v1412_v19 = vpack.c.bf16 %v1353_v17, %v1350_v16 }
 0x48d   : > { %v1421_v20 = vmul.bf16 1056980736, %v1413_v18 }
 0x48e   : > { %v1420_v21 = vmul.bf16 1056980736, %v1412_v19  ;;  %v2024_v22 = vpop.f32.mrb[20].mxu1 }
 0x48f   : > { %2325 = vtanh.bf16 %v1421_v20  ;;  %v1365_v23 = vpop.f32.mrb[21].mxu1  ;;  %v1374_v25 = vadd.f32 %v2024_v22, %v1796_v10  ;;  %v1506_v22 = vld [vmem:[#allocation3] sm:$0xff] }
 0x490   : > { %2327 = vtanh.bf16 %v1420_v21  ;;  %v2025_v24 = vpop.f32.mrb[22].mxu1  ;;  %v1366_v29 = vadd.f32 %v1796_v10, %v1365_v23  ;;  %v1509_v23 = vpop.xlane.xlu0 %1508 }
 0x491   : > { %v1377_v26 = vadd.f32 %v2025_v24, %v1796_v10  ;;  %v1368_v27 = vpop.f32.mrb[23].mxu1  ;;  %v1510_v24 = vadd.f32 %v1509_v23, %v1506_v22 }
 0x492   : > { %v1369_v30 = vadd.f32 %v1796_v10, %v1368_v27 }
 0x493   : > { %v1415_v28 = vpack.c.bf16 %v1377_v26, %v1374_v25  ;;  %1511 = vst [vmem:[#allocation3] sm:$0xff] %v1510_v24  ;;  %v1463_v25 = vld [vmem:[#allocation2] sm:$0xff] }
 0x494   : > { %v1414_v31 = vpack.c.bf16 %v1369_v30, %v1366_v29 }
 0x495   : > { %v1423_v32 = vmul.bf16 1056980736, %v1415_v28  ;;  %v1517_v28 = vld [vmem:[#allocation13] sm:$0xff] (!%p1809_p11) }
 0x496   : > { %v1422_v33 = vmul.bf16 1056980736, %v1414_v31  ;;  %v2028_v34 = vpop.f32.mrb[24].mxu1  ;;  %v2619_v31 = vmov (!%p1809_p11), 0.0|0.0  }
 0x497   : > { %2329 = vtanh.bf16 %v1423_v32  ;;  %v1381_v35 = vpop.f32.mrb[25].mxu1  ;;  %v1390_v37 = vadd.f32 %v2028_v34, %v1796_v10  ;;  %v2621_v34 = vmov (!%p1809_p11), 0.0  }
 0x498   : > { %2331 = vtanh.bf16 %v1422_v33  ;;  %v2029_v36 = vpop.f32.mrb[26].mxu1  ;;  %v1382_v41 = vadd.f32 %v1796_v10, %v1381_v35 }
 0x499   : > { %v1393_v38 = vadd.f32 %v2029_v36, %v1796_v10  ;;  %v1384_v39 = vpop.f32.mrb[27].mxu1  ;;  %v1521_v36 = vld [vmem:[#allocation13 + $0x20] sm:$0xff] (!%p1809_p11) }
 0x49a   : > { %v2326_v40 = vpop.eup %2325  ;;  %v1385_v42 = vadd.f32 %v1796_v10, %v1384_v39  ;;  %v1523_v39 = vld [vmem:[#allocation13 + $0x30] sm:$0xff] (!%p1809_p11) }
 0x49b   : > { %v2328_v43 = vpop.eup %2327  ;;  %v1417_v44 = vpack.c.bf16 %v1393_v38, %v1390_v37  ;;  %v1437_v48 = vadd.bf16 1065369472, %v2326_v40  ;;  %v1522_v37 = vld [vmem:[#allocation13 + $0x28] sm:$0xff] (!%p1809_p11)  ;;  %v1524_v40 = vld [vmem:[#allocation13 + $0x38] sm:$0xff] (!%p1809_p11) }
 0x49c   : > { %v1436_v46 = vadd.bf16 1065369472, %v2328_v43  ;;  %v1416_v47 = vpack.c.bf16 %v1385_v42, %v1382_v41  ;;  %v2096_v38 = vpack.c.bf16 (!%p1809_p11), %v1522_v37, %v1521_v36  ;;  %v2099_v41 = vpack.c.bf16 (!%p1809_p11), %v1524_v40, %v1523_v39  ;;  %v1525_v42 = vld [vmem:[#allocation13 + $0x40] sm:$0xff] (!%p1809_p11)  ;;  %v1526_v43 = vld [vmem:[#allocation13 + $0x48] sm:$0xff] (!%p1809_p11) }
 0x49d   : > { %v1425_v45 = vmul.bf16 1056980736, %v1417_v44  ;;  %v1445_v58 = vmul.bf16 %v1437_v48, %v1421_v20  ;;  %v2102_v44 = vpack.c.bf16 (!%p1809_p11), %v1526_v43, %v1525_v42  ;;  %v1529_v48 = vld [vmem:[#allocation13 + $0x60] sm:$0xff] (!%p1809_p11) }
 0x49e   : > { %v1444_v49 = vmul.bf16 %v1436_v46, %v1420_v21  ;;  %v1424_v50 = vmul.bf16 1056980736, %v1416_v47  ;;  %v2032_v51 = vpop.f32.mrb[28].mxu1  ;;  %v2618_v21 = vmov 1.0|1.0   ;;  %v1527_v46 = vld [vmem:[#allocation13 + $0x50] sm:$0xff] (!%p1809_p11) }
 0x49f   : > { %2333 = vtanh.bf16 %v1425_v45  ;;  %v1397_v52 = vpop.f32.mrb[29].mxu1  ;;  %v1406_v54 = vadd.f32 %v2032_v51, %v1796_v10  ;;  %v1528_v47 = vld [vmem:[#allocation13 + $0x58] sm:$0xff] (!%p1809_p11)  ;;  %v1531_v51 = vld [vmem:[#allocation13 + $0x70] sm:$0xff] (!%p1809_p11) }
 0x4a0   : > { %2335 = vtanh.bf16 %v1424_v50  ;;  %v2033_v53 = vpop.f32.mrb[30].mxu1  ;;  %2035 = vmatpush3.bf16.msra.mxu0 %v1444_v49  ;;  %v1398_v59 = vadd.f32 %v1796_v10, %v1397_v52  ;;  %v1530_v49 = vld [vmem:[#allocation13 + $0x68] sm:$0xff] (!%p1809_p11)  ;;  %v1532_v52 = vld [vmem:[#allocation13 + $0x78] sm:$0xff] (!%p1809_p11) }
 0x4a1   : > { %v1409_v55 = vadd.f32 %v2033_v53, %v1796_v10  ;;  %v1400_v56 = vpop.f32.mrb[31].mxu1  ;;  %2036 = vmatprep.subr.bf16.mxu0 %v2616_v4  ;;  %v2111_v53 = vpack.c.bf16 (!%p1809_p11), %v1532_v52, %v1531_v51 }
 0x4a2   : > { %v2330_v57 = vpop.eup %2329  ;;  %v1401_v61 = vadd.f32 %v1796_v10, %v1400_v56  ;;  %v1810_v56 = vld [vmem:[%s3103_s27] ss:$0 sm:$0xff] (!%p1809_p11) }
 0x4a3   : > { %v2332_v60 = vpop.eup %2331  ;;  %v1419_v62 = vpack.c.bf16 %v1409_v55, %v1406_v54  ;;  %v1439_v2 = vadd.bf16 1065369472, %v2330_v57  ;;  %v1533_v55 = vld [vmem:[#allocation3] sm:$0xff] (!%p1809_p11) }
 0x4a4   : > { %v1438_v63 = vadd.bf16 1065369472, %v2332_v60  ;;  %v1418_v0 = vpack.c.bf16 %v1401_v61, %v1398_v59  ;;  %2037 = vmatpush3.bf16.msra.mxu0 %v1445_v58  ;;  %v1541_v57 = vmul.f32 (!%p1809_p11), %v1810_v56, %v1533_v55 }
 0x4a5   : > { %v1427_v1 = vmul.bf16 1056980736, %v1419_v62  ;;  %2038 = vmatprep.subr.bf16.mxu0 %v2616_v4  ;;  %v1447_v9 = vmul.bf16 %v1439_v2, %v1423_v32  ;;  %v2090_v32 = vpack.c.bf16 (!%p1809_p11), %v1518_v6, %v1517_v28 }
 0x4a6   : > { %v1446_v3 = vmul.bf16 %v1438_v63, %v1422_v33  ;;  %v1426_v5 = vmul.bf16 1056980736, %v1418_v0  ;;  %v1520_v33 = vld [vmem:[#allocation13 + $0x18] sm:$0xff] (!%p1809_p11) }
 0x4a7   : > { %2337 = vtanh.bf16 %v1427_v1  ;;  %v2093_v35 = vpack.c.bf16 (!%p1809_p11), %v1520_v33, %v1519_v7 }
 0x4a8   : > { %2339 = vtanh.bf16 %v1426_v5  ;;  %2039 = vmatpush3.bf16.msra.mxu0 %v1446_v3 }
 0x4a9   : > { %2040 = vmatprep.subr.bf16.mxu0 %v2616_v4 }
 0x4aa   : > { %v2334_v8 = vpop.eup %2333 }
 0x4ab   : > { %v2336_v11 = vpop.eup %2335  ;;  %v1441_v12 = vadd.bf16 1065369472, %v2334_v8 }
 0x4ac   : > { %v1440_v10 = vadd.bf16 1065369472, %v2336_v11  ;;  %2041 = vmatpush3.bf16.msra.mxu0 %v1447_v9 }
 0x4ad   : > { %2042 = vmatprep.subr.bf16.mxu0 %v2616_v4  ;;  %v1449_v15 = vmul.bf16 %v1441_v12, %v1425_v45  ;;  %v2105_v45 = vpack.c.bf16 (!%p1809_p11), %v1528_v47, %v1527_v46 }
 0x4ae   : > { %v1448_v13 = vmul.bf16 %v1440_v10, %v1424_v50  ;;  %v2108_v50 = vpack.c.bf16 (!%p1809_p11), %v1530_v49, %v1529_v48 }
 0x4b0   : > { %2043 = vmatpush3.bf16.msra.mxu0 %v1448_v13 }
 0x4b1   : > { %2044 = vmatprep.subr.bf16.mxu0 %v2616_v4 }
 0x4b2   : > { %v2338_v14 = vpop.eup %2337 }
 0x4b3   : > { %v2340_v16 = vpop.eup %2339  ;;  %v1443_v18 = vadd.bf16 1065369472, %v2338_v14 }
 0x4b4   : > { %v1442_v17 = vadd.bf16 1065369472, %v2340_v16  ;;  %2045 = vmatpush3.bf16.msra.mxu0 %v1449_v15 }
 0x4b5   : > { %2046 = vmatprep.subr.bf16.mxu0 %v2616_v4  ;;  %v1451_v20 = vmul.bf16 %v1443_v18, %v1427_v1 }
 0x4b6   : > { %v1450_v19 = vmul.bf16 %v1442_v17, %v1426_v5 }
 0x4b8   : > { %2047 = vmatpush3.bf16.msra.mxu0 %v1450_v19 }
 0x4b9   : > { %2048 = vmatprep.subr.bf16.mxu0 %v2616_v4 }
 0x4bc   : > { %2049 = vmatpush3.bf16.msra.mxu0 %v1451_v20 }
 0x4bd   : > { %2089 = vmatprep.subr.bf16.mxu0 (!%p1809_p11), %v2619_v31 }
 0x4bf   : > { %2051 = vmatmul.mubr.msk.bf16.vlgmr.msra.gmra.mrb[32].mxu0 %vm1807_vm2, %v2618_v21 }
 0x4c0   : > { %2086 = vmatprep.mubr.msk.f32.mxu0 (!%p1809_p11), %vm2620_vm3, %v2621_v34  ;;  %2091 = vmatpush3.bf16.msra.mxu0 (!%p1809_p11), %v2090_v32 }
 0x4c1   : > { %2092 = vmatprep.subr.bf16.mxu0 (!%p1809_p11), %v2619_v31 }
 0x4c4   : > { %2094 = vmatpush3.bf16.msra.mxu0 (!%p1809_p11), %v2093_v35 }
 0x4c5   : > { %2095 = vmatprep.subr.bf16.mxu0 (!%p1809_p11), %v2619_v31 }
 0x4c8   : > { %2097 = vmatpush3.bf16.msra.mxu0 (!%p1809_p11), %v2096_v38 }
 0x4c9   : > { %2098 = vmatprep.subr.bf16.mxu0 (!%p1809_p11), %v2619_v31 }
 0x4cc   : > { %2100 = vmatpush3.bf16.msra.mxu0 (!%p1809_p11), %v2099_v41 }
 0x4cd   : > { %2101 = vmatprep.subr.bf16.mxu0 (!%p1809_p11), %v2619_v31 }
 0x4d0   : > { %2103 = vmatpush3.bf16.msra.mxu0 (!%p1809_p11), %v2102_v44 }
 0x4d1   : > { %2104 = vmatprep.subr.bf16.mxu0 (!%p1809_p11), %v2619_v31 }
 0x4d4   : > { %2106 = vmatpush3.bf16.msra.mxu0 (!%p1809_p11), %v2105_v45 }
 0x4d5   : > { %2107 = vmatprep.subr.bf16.mxu0 (!%p1809_p11), %v2619_v31 }
 0x4d8   : > { %2109 = vmatpush3.bf16.msra.mxu0 (!%p1809_p11), %v2108_v50 }
 0x4d9   : > { %2110 = vmatprep.subr.bf16.mxu0 (!%p1809_p11), %v2619_v31 }
 0x4dc   : > { %2112 = vmatpush3.bf16.msra.mxu0 (!%p1809_p11), %v2111_v53 }
 0x58f   : > { %1515 = sbr.rel (%p1809_p11) target bundleno = 1652 (0x674), region = 100 }
 0x592   : > { %v1498_v26 = vpop.f32.mrb[32].mxu0 }
 0x593   : > { %v1504_v27 = vadd.f32 %v1498_v26, %v1463_v25  ;;  %v2052_v29 = vpop.f32.mrb[33].mxu0 }
 0x594   : > { %v1501_v30 = vpop.f32.mrb[34].mxu0 }
 0x595   : > { %1505 = vst [vmem:[#allocation2] sm:$0xff] %v1504_v27  ;;  %v2053_v4 = vpop.f32.mrb[35].mxu0 }
 0x59c   : > { %v1516_v54 = vld [vmem:[#allocation2] sm:$0xff] }
 0x59d   : > { %2087 = vmatmul.mubr.f32.vlgmr.msra.gmra.mrb[0].mxu0 %v1516_v54 }
 0x670   : > { %v1608_v58 = vpop.f32.mrb[0].mxu0 }
 0x671   : > { %v1609_v59 = vadd.f32 %v1608_v58, %v1541_v57  ;;  %v2088_v61 = vpop.f32.mrb[1].mxu0 }
 0x673   : > { %1612 = vst [vmem:[#allocation15] sm:$0xff] %v1609_v59 }
 0x674 PF: > { %s3104_s19 = sadd.s32 4294967295, %s2603_s26   ;;  %s2622_s28 = smov [#allocation15]  }
 0x675   : > { %p3019_p12 = scmp.eq.s32.totalorder %s3104_s19, 1  ;;  %s1622_s7 = sshll.u32 %s2622_s28, 4  ;;  %s1623_s7 = int_to_ptr.vmem [resolvable:$true] %s1622_s7 }
 0x676   : > { %s2511_s11 = scalar_lea.vmem %s1623_s7, 128  ;;  %p2518_p6 = scmp.lt.s32.totalorder %s1623_s7, %s1623_s7 }
 0x677   : > { %p2512_p13 = scmp.ne.s32.totalorder %s1623_s7, %s2511_s11  ;;  %p2519_p9 = scmp.lt.s32.totalorder %s2511_s11, %s2511_s11 }
 0x679   : > { %p2513_p0 = pnand %p2512_p13, %p3019_p12  ;;  %p2520_p7 = por %p2519_p9, %p2518_p6 }
 0x67b   : > { %p2514_p2 = pneg %p2513_p0 }
 0x67d   : > { %p2521_p1 = pnand %p2520_p7, %p2514_p2 }
 0x67f   : > { %2524 = shalt.err (!%p2521_p1)
}
 0x680   : > { %s3106_s13 = sld [smem:[#allocation27_spill]] }
 0x686   : > { %s2525_s30 = scalar_lea.hbm %s3106_s13, 128 }
 0x687   : > { %p2526_p3 = scmp.ne.s32.totalorder %s3106_s13, %s2525_s30  ;;  %p2531_p4 = scmp.lt.u32.totalorder %s2525_s30, %s3106_s13 }
 0x689   : > { %p2527_p8 = pnand %p2526_p3, %p3019_p12 }
 0x68b   : > { %p2528_p10 = pneg %p2527_p8 }
 0x68d   : > { %p2533_p5 = pnand %p2531_p4, %p2528_p10 }
 0x68f   : > { %2536 = shalt.err (!%p2533_p5)
}
 0x690   : > { %2136 = dma.vmem_to_hbm [thread:$0]  (%p3019_p12), %s1623_s7, 128, %s3106_s13, [#allocation6]  }
 0x691   : > { %2578 = dma.done.wait (%p3019_p12), [#allocation6], 128  }
 0x692   : > { %2580 = vsyncadd (%p3019_p12), [#allocation6], 4294967168 }
 0x693 PF: > { %s29_s26 = sadd.s32 1, %s2603_s26   ;;  %s3107_s21 = smov %s2587_s22 }
 0x694   : > { %p26_p11 = scmp.ge.s32.totalorder %s29_s26, 4   ;;  %s3108_s22 = smov %s2591_s23 }
 0x695   : > { %s3109_s23 = smov %s2889_s17  ;;  %s3110_s24 = smov %s2599_s25 }
 0x696   : > { %s3111_s25 = smov %s3113_s3  ;;  %28 = sbr.rel (!%p26_p11) target bundleno = 16 (0x10), region = 137 }
 0x69d   :  { %1635 = vsyncpa [#allocation5], 1 }
 0x69e   :  { %1637 = vsyncpa [#allocation5 + $0x1], 1 }
 0x69f   :  { %1638 = vsyncpa [#allocation8], 1 }
 0x6a0   :  { %1639 = vsyncpa [#allocation11], 1 }
 0x6a1   :  { %1640 = vsyncpa [#allocation14], 1 }
 0x6a2   :  { %1641 = vsyncpa [#allocation6], 1 }
 0x6a3   :  { %1643 = vsyncpa [#allocation6 + $0x1], 1 }

</bundles_post_ra>
